<compile_context>
chip_gen: v7x
topology: tpu7x:2x2x1
jax: 0.10.0
libtpu: 0.0.40
codegen_flags: <defaults>
</compile_context>

<pallas_src>
import functools
import jax
import jax.numpy as jnp
from jax.experimental import pallas as pl
from jax.experimental.pallas import tpu as pltpu


# ---------------------------------------------------------------------------
# Fused block kernel (factory closes over static shape/config)
# ---------------------------------------------------------------------------

def _make_block_kernel(H, W, Cin, Cout, stride, equal_in_out):
    Ho, Wo = H // stride, W // stride
    M = Ho * Wo

    def kernel(*refs):
        if equal_in_out:
            (x_ref, w1_ref, w2_ref, s1_ref, t1_ref, s2_ref, t2_ref,
             out_ref, a_ref, h_ref) = refs
            wsc_ref = None
        else:
            (x_ref, w1_ref, w2_ref, wsc_ref, s1_ref, t1_ref, s2_ref, t2_ref,
             out_ref, a_ref, h_ref) = refs

        # ---- a = relu(bn1(x)), fused into the A-load; zero-padded bf16 VMEM scratch ----
        a_ref[...] = jnp.zeros_like(a_ref)      # zero borders (conv padding)
        h_ref[...] = jnp.zeros_like(h_ref)
        av = jnp.maximum(x_ref[...] * s1_ref[...] + t1_ref[...], 0.0).astype(jnp.bfloat16)
        if stride == 1:
            a_ref[1:H + 1, 1:W + 1, :] = av
        else:
            # phase-split padded layout: a_ref[i, py, j, px*Cin + c] = a_pad2[2i+py, 2j+px, c]
            a_ref[1:Ho + 1, :, 1:Wo + 1, :] = av

        def conv1_tap(dy, dx):                   # (M, Cin) bf16 slab for tap (dy, dx)
            if stride == 1:
                sl = a_ref[dy:dy + Ho, dx:dx + Wo, :]
            else:
                ry, py = (1 + dy) // 2, (1 + dy) % 2
                rx, px = (1 + dx) // 2, (1 + dx) % 2
                sl = a_ref[ry:ry + Ho, py, rx:rx + Wo, px * Cin:(px + 1) * Cin]
            return sl.reshape(M, Cin)

        # ---- conv1: 9 tap matmuls (+ dense centre-tap 1x1 shortcut when needed) ----
        acc = jnp.zeros((M, Cout), jnp.float32)
        shortcut = None
        for t in range(9):
            dy, dx = divmod(t, 3)
            slab = conv1_tap(dy, dx)
            acc = acc + jnp.dot(slab, w1_ref[t], preferred_element_type=jnp.float32)
            if (not equal_in_out) and t == 4:
                shortcut = jnp.dot(slab, wsc_ref[...], preferred_element_type=jnp.float32)

        # ---- BN2 + ReLU epilogue; h stays in VMEM (bf16), zero-padded for conv2 ----
        h = jnp.maximum(acc * s2_ref[...] + t2_ref[...], 0.0).astype(jnp.bfloat16)
        h_ref[1:Ho + 1, 1:Wo + 1, :] = h.reshape(Ho, Wo, Cout)
        # TODO(synk): F.dropout for dropRate > 0 not implemented (module default 0.0 -> no-op).

        # ---- conv2 (stride 1) with fused residual-add epilogue ----
        acc2 = jnp.zeros((M, Cout), jnp.float32) if equal_in_out else shortcut
        for t in range(9):
            dy, dx = divmod(t, 3)
            slab = h_ref[dy:dy + Ho, dx:dx + Wo, :].reshape(M, Cout)
            acc2 = acc2 + jnp.dot(slab, w2_ref[t], preferred_element_type=jnp.float32)

        out = acc2.reshape(Ho, Wo, Cout)
        if equal_in_out:
            out = out + x_ref[...]               # identity residual (pre-BN x), f32
        out_ref[...] = out.astype(out_ref.dtype)

    return kernel


# ---------------------------------------------------------------------------
# Wrapper: one pallas_call per block, grid over the batch dimension
# ---------------------------------------------------------------------------

def basic_block_forward(prep, x_nchw, *, stride, equal_in_out):
    N, Cin, H, W = x_nchw.shape
    Cout = prep["w1"].shape[-1]
    assert H % stride == 0 and W % stride == 0
    assert not (equal_in_out and stride != 1), "identity shortcut requires stride 1"
    if equal_in_out:
        assert Cin == Cout
    Ho, Wo = H // stride, W // stride

    # NCHW -> NHWC once at the block boundary (hoist to the network boundary when chaining).
    x = jnp.transpose(x_nchw, (0, 2, 3, 1)).astype(jnp.float32)

    if stride == 1:
        x_in = x
        x_spec = pl.BlockSpec((None, H, W, Cin), lambda n: (n, 0, 0, 0))
        a_scratch = pltpu.VMEM((H + 2, W + 2, Cin), jnp.bfloat16)
        s1_spec = pl.BlockSpec((1, 1, Cin), lambda n: (0, 0, 0))
    else:
        # Free (contiguous, zero-copy) reshape into a 2x2 phase layout so stride-2 taps
        # become plain contiguous slices inside the kernel.
        x_in = x.reshape(N, Ho, 2, Wo, 2 * Cin)
        x_spec = pl.BlockSpec((None, Ho, 2, Wo, 2 * Cin), lambda n: (n, 0, 0, 0, 0))
        a_scratch = pltpu.VMEM((Ho + 1, 2, Wo + 1, 2 * Cin), jnp.bfloat16)
        s1_spec = pl.BlockSpec((1, 1, 1, 2 * Cin), lambda n: (0, 0, 0, 0))

    operands = [x_in, prep["w1"], prep["w2"]]
    in_specs = [
        x_spec,
        pl.BlockSpec((9, Cin, Cout), lambda n: (0, 0, 0)),
        pl.BlockSpec((9, Cout, Cout), lambda n: (0, 0, 0)),
    ]
    if not equal_in_out:
        operands.append(prep["w_sc"])
        in_specs.append(pl.BlockSpec((Cin, Cout), lambda n: (0, 0)))
    operands += [prep["bn1_scale"], prep["bn1_shift"],
                 prep["bn2_scale"], prep["bn2_shift"]]
    bn2_spec = pl.BlockSpec((1, Cout), lambda n: (0, 0))
    in_specs += [s1_spec, s1_spec, bn2_spec, bn2_spec]

    out = pl.pallas_call(
        _make_block_kernel(H, W, Cin, Cout, stride, equal_in_out),
        out_shape=jax.ShapeDtypeStruct((N, Ho, Wo, Cout), jnp.float32),
        grid=(N,),
        in_specs=in_specs,
        out_specs=pl.BlockSpec((None, Ho, Wo, Cout), lambda n: (n, 0, 0, 0)),
        scratch_shapes=[a_scratch, pltpu.VMEM((Ho + 2, Wo + 2, Cout), jnp.bfloat16)],
        compiler_params=pltpu.CompilerParams(
            dimension_semantics=("parallel",),
            vmem_limit_bytes=32 * 1024 * 1024),
    )(*operands)

    return jnp.transpose(out, (0, 3, 1, 2))     # NHWC -> NCHW at the block boundary


# ---------------------------------------------------------------------------
# Parameter preparation (done ONCE, outside the jitted forward)
# ---------------------------------------------------------------------------

def prepare_block_params(raw, stride, eps=1e-5):
    def bn_fold(g, b, m, v):
        s = g / jnp.sqrt(v + eps)
        return s.astype(jnp.float32), (b - m * s).astype(jnp.float32)

    cout, cin = raw["conv1_w"].shape[0], raw["conv1_w"].shape[1]
    s1, t1 = bn_fold(raw["bn1_g"], raw["bn1_b"], raw["bn1_m"], raw["bn1_v"])
    s2, t2 = bn_fold(raw["bn2_g"], raw["bn2_b"], raw["bn2_m"], raw["bn2_v"])

    def conv_taps(w_oihw):  # (O, I, 3, 3) -> (9, I, O), tap-major (t = dy*3 + dx)
        o, i, _, _ = w_oihw.shape
        return jnp.transpose(w_oihw, (2, 3, 1, 0)).reshape(9, i, o)

    if stride == 1:
        bn1_scale = s1.reshape(1, 1, cin)
        bn1_shift = t1.reshape(1, 1, cin)
    else:  # phase-split input carries 2 columns' channels side by side -> tile params 2x
        bn1_scale = jnp.tile(s1, 2).reshape(1, 1, 1, 2 * cin)
        bn1_shift = jnp.tile(t1, 2).reshape(1, 1, 1, 2 * cin)

    prep = {
        "bn1_scale": bn1_scale, "bn1_shift": bn1_shift,
        "bn2_scale": s2.reshape(1, cout), "bn2_shift": t2.reshape(1, cout),
        "w1": conv_taps(raw["conv1_w"]).astype(jnp.bfloat16),
        "w2": conv_taps(raw["conv2_w"]).astype(jnp.bfloat16),
    }
    if "sc_w" in raw:
        prep["w_sc"] = jnp.transpose(raw["sc_w"][:, :, 0, 0]).astype(jnp.bfloat16)  # (Cin, Cout)
    return prep


# ---------------------------------------------------------------------------
# Deterministic raw parameters + pure-JAX f32 reference
# ---------------------------------------------------------------------------

def _kaiming_conv(key, o, i, kh, kw):
    std = (2.0 / (o * kh * kw)) ** 0.5
    return std * jax.random.normal(key, (o, i, kh, kw), jnp.float32)


def make_raw_block_params(key, in_planes, out_planes, with_shortcut):
    ks = jax.random.split(key, 11)

    def bn(kg, kb, km, kv, c):  # randomized BN affine + running stats
        return (jax.random.uniform(kg, (c,), jnp.float32, 0.5, 1.5),
                0.1 * jax.random.normal(kb, (c,), jnp.float32),
                0.1 * jax.random.normal(km, (c,), jnp.float32),
                jax.random.uniform(kv, (c,), jnp.float32, 0.5, 1.5))

    g1, b1, m1, v1 = bn(ks[0], ks[1], ks[2], ks[3], in_planes)
    g2, b2, m2, v2 = bn(ks[4], ks[5], ks[6], ks[7], out_planes)
    raw = {
        "bn1_g": g1, "bn1_b": b1, "bn1_m": m1, "bn1_v": v1,
        "conv1_w": _kaiming_conv(ks[8], out_planes, in_planes, 3, 3),
        "bn2_g": g2, "bn2_b": b2, "bn2_m": m2, "bn2_v": v2,
        "conv2_w": _kaiming_conv(ks[9], out_planes, out_planes, 3, 3),
    }
    if with_shortcut:
        raw["sc_w"] = _kaiming_conv(ks[10], out_planes, in_planes, 1, 1)
    return raw


def _ref_basic_block(raw, x_nchw, stride, equal_in_out, eps=1e-5):
    def bn(x, g, b, m, v):
        inv = g / jnp.sqrt(v + eps)
        return x * inv[None, :, None, None] + (b - m * inv)[None, :, None, None]

    def conv(x, w, s, pad):
        return jax.lax.conv_general_dilated(
            x, w, (s, s), [(pad, pad), (pad, pad)],
            dimension_numbers=("NCHW", "OIHW", "NCHW"),
            precision=jax.lax.Precision.HIGHEST)

    a = jax.nn.relu(bn(x_nchw, raw["bn1_g"], raw["bn1_b"], raw["bn1_m"], raw["bn1_v"]))
    out = conv(a, raw["conv1_w"], stride, 1)
    out = jax.nn.relu(bn(out, raw["bn2_g"], raw["bn2_b"], raw["bn2_m"], raw["bn2_v"]))
    out = conv(out, raw["conv2_w"], 1, 1)
    sc = x_nchw if equal_in_out else conv(a, raw["sc_w"], stride, 0)
    return sc + out


# ---------------------------------------------------------------------------
# Main
# ---------------------------------------------------------------------------

if __name__ == "__main__":
    key = jax.random.PRNGKey(0)
    k_ds, k_id, k_x = jax.random.split(key, 3)

    # Small CIFAR-style input: (batch=2, channels=8, 16x16)
    x = jax.random.normal(k_x, (2, 8, 16, 16), jnp.float32)

    # Case 1: downsampling block (in=8, out=16, stride=2) -> 1x1 convShortcut path.
    raw_ds = make_raw_block_params(k_ds, 8, 16, with_shortcut=True)
    prep_ds = prepare_block_params(raw_ds, stride=2)
    fwd_ds = jax.jit(functools.partial(basic_block_forward, prep_ds,
                                       stride=2, equal_in_out=False))

    # Case 2: identity block (in=out=8, stride=1) -> identity shortcut path.
    raw_id = make_raw_block_params(k_id, 8, 8, with_shortcut=False)
    prep_id = prepare_block_params(raw_id, stride=1)
    fwd_id = jax.jit(functools.partial(basic_block_forward, prep_id,
                                       stride=1, equal_in_out=True))

    y_ds = fwd_ds(x)
    y_id = fwd_id(x)
    jax.block_until_ready((y_ds, y_id))

    assert y_ds.shape == (2, 16, 8, 8)
    assert y_id.shape == (2, 8, 16, 16)

    # Correctness vs. a pure-JAX f32 reference (bf16 MXU inputs, f32 accumulation).
    ref_ds = _ref_basic_block(raw_ds, x, 2, False)
    ref_id = _ref_basic_block(raw_id, x, 1, True)
    for y, ref in ((y_ds, ref_ds), (y_id, ref_id)):
        rel = float(jnp.max(jnp.abs(y - ref)) / (1e-6 + jnp.max(jnp.abs(ref))))
        assert rel < 2e-2, f"mismatch vs reference: rel={rel}"

    print("KERNEL_OK")
</pallas_src>

<mosaic_0001>
module attributes {stable_mosaic.version = 11 : i64} {
  func.func @kernel(%arg0: i32, %arg1: memref<1x8x2x8x16xf32, #tpu.memory_space<vmem>>, %arg2: memref<9x8x16xbf16, #tpu.memory_space<vmem>>, %arg3: memref<9x16x16xbf16, #tpu.memory_space<vmem>>, %arg4: memref<8x16xbf16, #tpu.memory_space<vmem>>, %arg5: memref<1x1x1x16xf32, #tpu.memory_space<vmem>>, %arg6: memref<1x1x1x16xf32, #tpu.memory_space<vmem>>, %arg7: memref<1x16xf32, #tpu.memory_space<vmem>>, %arg8: memref<1x16xf32, #tpu.memory_space<vmem>>, %arg9: memref<1x8x8x16xf32, #tpu.memory_space<vmem>>, %arg10: memref<9x2x9x16xbf16, #tpu.memory_space<vmem>>, %arg11: memref<10x10x16xbf16, #tpu.memory_space<vmem>>) attributes {dimension_semantics = [#tpu.dimension_semantics<parallel>], iteration_bounds = array<i64: 2>, scalar_prefetch = 0 : i64, scratch_operands = 2 : i64, tpu.core_type = #tpu.core_type<tc>, window_params = [{transform_indices = @transform_0, window_bounds = array<i64: 1, 8, 2, 8, 16>}, {pipeline_mode = #tpu.pipeline_mode<synchronous>, transform_indices = @transform_1, window_bounds = array<i64: 9, 8, 16>}, {pipeline_mode = #tpu.pipeline_mode<synchronous>, transform_indices = @transform_2, window_bounds = array<i64: 9, 16, 16>}, {pipeline_mode = #tpu.pipeline_mode<synchronous>, transform_indices = @transform_3, window_bounds = array<i64: 8, 16>}, {pipeline_mode = #tpu.pipeline_mode<synchronous>, transform_indices = @transform_4, window_bounds = array<i64: 1, 1, 1, 16>}, {pipeline_mode = #tpu.pipeline_mode<synchronous>, transform_indices = @transform_5, window_bounds = array<i64: 1, 1, 1, 16>}, {pipeline_mode = #tpu.pipeline_mode<synchronous>, transform_indices = @transform_6, window_bounds = array<i64: 1, 16>}, {pipeline_mode = #tpu.pipeline_mode<synchronous>, transform_indices = @transform_7, window_bounds = array<i64: 1, 16>}, {transform_indices = @transform_8, window_bounds = array<i64: 1, 8, 8, 16>}]} {
    %cst = arith.constant 0.000000e+00 : bf16
    %0 = vector.broadcast %cst : bf16 to vector<9x2x9x16xbf16>
    %c0 = arith.constant 0 : index
    %c0_0 = arith.constant 0 : index
    %c0_1 = arith.constant 0 : index
    %c0_2 = arith.constant 0 : index
    %1 = vector.load %arg10[%c0, %c0_0, %c0_1, %c0_2] : memref<9x2x9x16xbf16, #tpu.memory_space<vmem>>, vector<9x2x9x16xbf16>
    tpu.vector_store %arg10[%c0, %c0_0, %c0_1, %c0_2], %0 {strides = array<i32>} : memref<9x2x9x16xbf16, #tpu.memory_space<vmem>>, vector<9x2x9x16xbf16>,
    %cst_3 = arith.constant 0.000000e+00 : bf16
    %2 = vector.broadcast %cst_3 : bf16 to vector<10x10x16xbf16>
    %c0_4 = arith.constant 0 : index
    %c0_5 = arith.constant 0 : index
    %c0_6 = arith.constant 0 : index
    %3 = vector.load %arg11[%c0_4, %c0_5, %c0_6] : memref<10x10x16xbf16, #tpu.memory_space<vmem>>, vector<10x10x16xbf16>
    tpu.vector_store %arg11[%c0_4, %c0_5, %c0_6], %2 {strides = array<i32>} : memref<10x10x16xbf16, #tpu.memory_space<vmem>>, vector<10x10x16xbf16>,
    %c0_7 = arith.constant 0 : index
    %c0_8 = arith.constant 0 : index
    %c0_9 = arith.constant 0 : index
    %c0_10 = arith.constant 0 : index
    %c0_11 = arith.constant 0 : index
    %4 = vector.load %arg1[%c0_7, %c0_8, %c0_9, %c0_10, %c0_11] : memref<1x8x2x8x16xf32, #tpu.memory_space<vmem>>, vector<1x8x2x8x16xf32>
    %5 = vector.shape_cast %4 : vector<1x8x2x8x16xf32> to vector<8x2x8x16xf32>
    %c0_12 = arith.constant 0 : index
    %c0_13 = arith.constant 0 : index
    %c0_14 = arith.constant 0 : index
    %c0_15 = arith.constant 0 : index
    %6 = vector.load %arg5[%c0_12, %c0_13, %c0_14, %c0_15] : memref<1x1x1x16xf32, #tpu.memory_space<vmem>>, vector<1x1x1x16xf32>
    %7 = vector.broadcast %6 : vector<1x1x1x16xf32> to vector<8x2x8x16xf32>
    %8 = arith.mulf %5, %7 : vector<8x2x8x16xf32>
    %c0_16 = arith.constant 0 : index
    %c0_17 = arith.constant 0 : index
    %c0_18 = arith.constant 0 : index
    %c0_19 = arith.constant 0 : index
    %9 = vector.load %arg6[%c0_16, %c0_17, %c0_18, %c0_19] : memref<1x1x1x16xf32, #tpu.memory_space<vmem>>, vector<1x1x1x16xf32>
    %10 = vector.broadcast %9 : vector<1x1x1x16xf32> to vector<8x2x8x16xf32>
    %11 = arith.addf %8, %10 : vector<8x2x8x16xf32>
    %cst_20 = arith.constant 0.000000e+00 : f32
    %12 = vector.broadcast %cst_20 : f32 to vector<8x2x8x16xf32>
    %13 = arith.maximumf %11, %12 : vector<8x2x8x16xf32>
    %14 = arith.truncf %13 : vector<8x2x8x16xf32> to vector<8x2x8x16xbf16>
    %c1 = arith.constant 1 : index
    %c0_21 = arith.constant 0 : index
    %c1_22 = arith.constant 1 : index
    %c0_23 = arith.constant 0 : index
    %15 = vector.load %arg10[%c1, %c0_21, %c1_22, %c0_23] : memref<9x2x9x16xbf16, #tpu.memory_space<vmem>>, vector<8x2x8x16xbf16>
    tpu.vector_store %arg10[%c1, %c0_21, %c1_22, %c0_23], %14 {strides = array<i32>} : memref<9x2x9x16xbf16, #tpu.memory_space<vmem>>, vector<8x2x8x16xbf16>,
    %cst_24 = arith.constant 0.000000e+00 : f32
    %16 = vector.broadcast %cst_24 : f32 to vector<64x16xf32>
    %c0_25 = arith.constant 0 : index
    %c1_26 = arith.constant 1 : index
    %c0_27 = arith.constant 0 : index
    %c8 = arith.constant 8 : index
    %17 = vector.load %arg10[%c0_25, %c1_26, %c0_27, %c8] : memref<9x2x9x16xbf16, #tpu.memory_space<vmem>>, vector<8x1x8x8xbf16>
    %18 = vector.shape_cast %17 : vector<8x1x8x8xbf16> to vector<8x8x8xbf16>
    %19 = vector.shape_cast %18 : vector<8x8x8xbf16> to vector<64x8xbf16>
    %c0_28 = arith.constant 0 : index
    %c0_29 = arith.constant 0 : index
    %c0_30 = arith.constant 0 : index
    %20 = vector.load %arg2[%c0_28, %c0_29, %c0_30] : memref<9x8x16xbf16, #tpu.memory_space<vmem>>, vector<1x8x16xbf16>
    %21 = vector.shape_cast %20 : vector<1x8x16xbf16> to vector<8x16xbf16>
    %cst_31 = arith.constant dense<0.000000e+00> : vector<64x16xf32>
    %22 = tpu.matmul %19, %21, %cst_31 {dimension_numbers = #tpu.dot_dimension_numbers<[1], [0], [0], [1], [0, 0, 1, 1], [], []>} : vector<64x8xbf16>, vector<8x16xbf16>, vector<64x16xf32> -> vector<64x16xf32>
    %23 = arith.addf %16, %22 : vector<64x16xf32>
    %c0_32 = arith.constant 0 : index
    %c1_33 = arith.constant 1 : index
    %c1_34 = arith.constant 1 : index
    %c0_35 = arith.constant 0 : index
    %24 = vector.load %arg10[%c0_32, %c1_33, %c1_34, %c0_35] : memref<9x2x9x16xbf16, #tpu.memory_space<vmem>>, vector<8x1x8x8xbf16>
    %25 = vector.shape_cast %24 : vector<8x1x8x8xbf16> to vector<8x8x8xbf16>
    %26 = vector.shape_cast %25 : vector<8x8x8xbf16> to vector<64x8xbf16>
    %c1_36 = arith.constant 1 : index
    %c0_37 = arith.constant 0 : index
    %c0_38 = arith.constant 0 : index
    %27 = vector.load %arg2[%c1_36, %c0_37, %c0_38] : memref<9x8x16xbf16, #tpu.memory_space<vmem>>, vector<1x8x16xbf16>
    %28 = vector.shape_cast %27 : vector<1x8x16xbf16> to vector<8x16xbf16>
    %cst_39 = arith.constant dense<0.000000e+00> : vector<64x16xf32>
    %29 = tpu.matmul %26, %28, %cst_39 {dimension_numbers = #tpu.dot_dimension_numbers<[1], [0], [0], [1], [0, 0, 1, 1], [], []>} : vector<64x8xbf16>, vector<8x16xbf16>, vector<64x16xf32> -> vector<64x16xf32>
    %30 = arith.addf %23, %29 : vector<64x16xf32>
    %c0_40 = arith.constant 0 : index
    %c1_41 = arith.constant 1 : index
    %c1_42 = arith.constant 1 : index
    %c8_43 = arith.constant 8 : index
    %31 = vector.load %arg10[%c0_40, %c1_41, %c1_42, %c8_43] : memref<9x2x9x16xbf16, #tpu.memory_space<vmem>>, vector<8x1x8x8xbf16>
    %32 = vector.shape_cast %31 : vector<8x1x8x8xbf16> to vector<8x8x8xbf16>
    %33 = vector.shape_cast %32 : vector<8x8x8xbf16> to vector<64x8xbf16>
    %c2 = arith.constant 2 : index
    %c0_44 = arith.constant 0 : index
    %c0_45 = arith.constant 0 : index
    %34 = vector.load %arg2[%c2, %c0_44, %c0_45] : memref<9x8x16xbf16, #tpu.memory_space<vmem>>, vector<1x8x16xbf16>
    %35 = vector.shape_cast %34 : vector<1x8x16xbf16> to vector<8x16xbf16>
    %cst_46 = arith.constant dense<0.000000e+00> : vector<64x16xf32>
    %36 = tpu.matmul %33, %35, %cst_46 {dimension_numbers = #tpu.dot_dimension_numbers<[1], [0], [0], [1], [0, 0, 1, 1], [], []>} : vector<64x8xbf16>, vector<8x16xbf16>, vector<64x16xf32> -> vector<64x16xf32>
    %37 = arith.addf %30, %36 : vector<64x16xf32>
    %c1_47 = arith.constant 1 : index
    %c0_48 = arith.constant 0 : index
    %c0_49 = arith.constant 0 : index
    %c8_50 = arith.constant 8 : index
    %38 = vector.load %arg10[%c1_47, %c0_48, %c0_49, %c8_50] : memref<9x2x9x16xbf16, #tpu.memory_space<vmem>>, vector<8x1x8x8xbf16>
    %39 = vector.shape_cast %38 : vector<8x1x8x8xbf16> to vector<8x8x8xbf16>
    %40 = vector.shape_cast %39 : vector<8x8x8xbf16> to vector<64x8xbf16>
    %c3 = arith.constant 3 : index
    %c0_51 = arith.constant 0 : index
    %c0_52 = arith.constant 0 : index
    %41 = vector.load %arg2[%c3, %c0_51, %c0_52] : memref<9x8x16xbf16, #tpu.memory_space<vmem>>, vector<1x8x16xbf16>
    %42 = vector.shape_cast %41 : vector<1x8x16xbf16> to vector<8x16xbf16>
    %cst_53 = arith.constant dense<0.000000e+00> : vector<64x16xf32>
    %43 = tpu.matmul %40, %42, %cst_53 {dimension_numbers = #tpu.dot_dimension_numbers<[1], [0], [0], [1], [0, 0, 1, 1], [], []>} : vector<64x8xbf16>, vector<8x16xbf16>, vector<64x16xf32> -> vector<64x16xf32>
    %44 = arith.addf %37, %43 : vector<64x16xf32>
    %c1_54 = arith.constant 1 : index
    %c0_55 = arith.constant 0 : index
    %c1_56 = arith.constant 1 : index
    %c0_57 = arith.constant 0 : index
    %45 = vector.load %arg10[%c1_54, %c0_55, %c1_56, %c0_57] : memref<9x2x9x16xbf16, #tpu.memory_space<vmem>>, vector<8x1x8x8xbf16>
    %46 = vector.shape_cast %45 : vector<8x1x8x8xbf16> to vector<8x8x8xbf16>
    %47 = vector.shape_cast %46 : vector<8x8x8xbf16> to vector<64x8xbf16>
    %c4 = arith.constant 4 : index
    %c0_58 = arith.constant 0 : index
    %c0_59 = arith.constant 0 : index
    %48 = vector.load %arg2[%c4, %c0_58, %c0_59] : memref<9x8x16xbf16, #tpu.memory_space<vmem>>, vector<1x8x16xbf16>
    %49 = vector.shape_cast %48 : vector<1x8x16xbf16> to vector<8x16xbf16>
    %cst_60 = arith.constant dense<0.000000e+00> : vector<64x16xf32>
    %50 = tpu.matmul %47, %49, %cst_60 {dimension_numbers = #tpu.dot_dimension_numbers<[1], [0], [0], [1], [0, 0, 1, 1], [], []>} : vector<64x8xbf16>, vector<8x16xbf16>, vector<64x16xf32> -> vector<64x16xf32>
    %51 = arith.addf %44, %50 : vector<64x16xf32>
    %c0_61 = arith.constant 0 : index
    %c0_62 = arith.constant 0 : index
    %52 = vector.load %arg4[%c0_61, %c0_62] : memref<8x16xbf16, #tpu.memory_space<vmem>>, vector<8x16xbf16>
    %cst_63 = arith.constant dense<0.000000e+00> : vector<64x16xf32>
    %53 = tpu.matmul %47, %52, %cst_63 {dimension_numbers = #tpu.dot_dimension_numbers<[1], [0], [0], [1], [0, 0, 1, 1], [], []>} : vector<64x8xbf16>, vector<8x16xbf16>, vector<64x16xf32> -> vector<64x16xf32>
    %c1_64 = arith.constant 1 : index
    %c0_65 = arith.constant 0 : index
    %c1_66 = arith.constant 1 : index
    %c8_67 = arith.constant 8 : index
    %54 = vector.load %arg10[%c1_64, %c0_65, %c1_66, %c8_67] : memref<9x2x9x16xbf16, #tpu.memory_space<vmem>>, vector<8x1x8x8xbf16>
    %55 = vector.shape_cast %54 : vector<8x1x8x8xbf16> to vector<8x8x8xbf16>
    %56 = vector.shape_cast %55 : vector<8x8x8xbf16> to vector<64x8xbf16>
    %c5 = arith.constant 5 : index
    %c0_68 = arith.constant 0 : index
    %c0_69 = arith.constant 0 : index
    %57 = vector.load %arg2[%c5, %c0_68, %c0_69] : memref<9x8x16xbf16, #tpu.memory_space<vmem>>, vector<1x8x16xbf16>
    %58 = vector.shape_cast %57 : vector<1x8x16xbf16> to vector<8x16xbf16>
    %cst_70 = arith.constant dense<0.000000e+00> : vector<64x16xf32>
    %59 = tpu.matmul %56, %58, %cst_70 {dimension_numbers = #tpu.dot_dimension_numbers<[1], [0], [0], [1], [0, 0, 1, 1], [], []>} : vector<64x8xbf16>, vector<8x16xbf16>, vector<64x16xf32> -> vector<64x16xf32>
    %60 = arith.addf %51, %59 : vector<64x16xf32>
    %c1_71 = arith.constant 1 : index
    %c1_72 = arith.constant 1 : index
    %c0_73 = arith.constant 0 : index
    %c8_74 = arith.constant 8 : index
    %61 = vector.load %arg10[%c1_71, %c1_72, %c0_73, %c8_74] : memref<9x2x9x16xbf16, #tpu.memory_space<vmem>>, vector<8x1x8x8xbf16>
    %62 = vector.shape_cast %61 : vector<8x1x8x8xbf16> to vector<8x8x8xbf16>
    %63 = vector.shape_cast %62 : vector<8x8x8xbf16> to vector<64x8xbf16>
    %c6 = arith.constant 6 : index
    %c0_75 = arith.constant 0 : index
    %c0_76 = arith.constant 0 : index
    %64 = vector.load %arg2[%c6, %c0_75, %c0_76] : memref<9x8x16xbf16, #tpu.memory_space<vmem>>, vector<1x8x16xbf16>
    %65 = vector.shape_cast %64 : vector<1x8x16xbf16> to vector<8x16xbf16>
    %cst_77 = arith.constant dense<0.000000e+00> : vector<64x16xf32>
    %66 = tpu.matmul %63, %65, %cst_77 {dimension_numbers = #tpu.dot_dimension_numbers<[1], [0], [0], [1], [0, 0, 1, 1], [], []>} : vector<64x8xbf16>, vector<8x16xbf16>, vector<64x16xf32> -> vector<64x16xf32>
    %67 = arith.addf %60, %66 : vector<64x16xf32>
    %c1_78 = arith.constant 1 : index
    %c1_79 = arith.constant 1 : index
    %c1_80 = arith.constant 1 : index
    %c0_81 = arith.constant 0 : index
    %68 = vector.load %arg10[%c1_78, %c1_79, %c1_80, %c0_81] : memref<9x2x9x16xbf16, #tpu.memory_space<vmem>>, vector<8x1x8x8xbf16>
    %69 = vector.shape_cast %68 : vector<8x1x8x8xbf16> to vector<8x8x8xbf16>
    %70 = vector.shape_cast %69 : vector<8x8x8xbf16> to vector<64x8xbf16>
    %c7 = arith.constant 7 : index
    %c0_82 = arith.constant 0 : index
    %c0_83 = arith.constant 0 : index
    %71 = vector.load %arg2[%c7, %c0_82, %c0_83] : memref<9x8x16xbf16, #tpu.memory_space<vmem>>, vector<1x8x16xbf16>
    %72 = vector.shape_cast %71 : vector<1x8x16xbf16> to vector<8x16xbf16>
    %cst_84 = arith.constant dense<0.000000e+00> : vector<64x16xf32>
    %73 = tpu.matmul %70, %72, %cst_84 {dimension_numbers = #tpu.dot_dimension_numbers<[1], [0], [0], [1], [0, 0, 1, 1], [], []>} : vector<64x8xbf16>, vector<8x16xbf16>, vector<64x16xf32> -> vector<64x16xf32>
    %74 = arith.addf %67, %73 : vector<64x16xf32>
    %c1_85 = arith.constant 1 : index
    %c1_86 = arith.constant 1 : index
    %c1_87 = arith.constant 1 : index
    %c8_88 = arith.constant 8 : index
    %75 = vector.load %arg10[%c1_85, %c1_86, %c1_87, %c8_88] : memref<9x2x9x16xbf16, #tpu.memory_space<vmem>>, vector<8x1x8x8xbf16>
    %76 = vector.shape_cast %75 : vector<8x1x8x8xbf16> to vector<8x8x8xbf16>
    %77 = vector.shape_cast %76 : vector<8x8x8xbf16> to vector<64x8xbf16>
    %c8_89 = arith.constant 8 : index
    %c0_90 = arith.constant 0 : index
    %c0_91 = arith.constant 0 : index
    %78 = vector.load %arg2[%c8_89, %c0_90, %c0_91] : memref<9x8x16xbf16, #tpu.memory_space<vmem>>, vector<1x8x16xbf16>
    %79 = vector.shape_cast %78 : vector<1x8x16xbf16> to vector<8x16xbf16>
    %cst_92 = arith.constant dense<0.000000e+00> : vector<64x16xf32>
    %80 = tpu.matmul %77, %79, %cst_92 {dimension_numbers = #tpu.dot_dimension_numbers<[1], [0], [0], [1], [0, 0, 1, 1], [], []>} : vector<64x8xbf16>, vector<8x16xbf16>, vector<64x16xf32> -> vector<64x16xf32>
    %81 = arith.addf %74, %80 : vector<64x16xf32>
    %c0_93 = arith.constant 0 : index
    %c0_94 = arith.constant 0 : index
    %82 = vector.load %arg7[%c0_93, %c0_94] : memref<1x16xf32, #tpu.memory_space<vmem>>, vector<1x16xf32>
    %83 = vector.broadcast %82 : vector<1x16xf32> to vector<64x16xf32>
    %84 = arith.mulf %81, %83 : vector<64x16xf32>
    %c0_95 = arith.constant 0 : index
    %c0_96 = arith.constant 0 : index
    %85 = vector.load %arg8[%c0_95, %c0_96] : memref<1x16xf32, #tpu.memory_space<vmem>>, vector<1x16xf32>
    %86 = vector.broadcast %85 : vector<1x16xf32> to vector<64x16xf32>
    %87 = arith.addf %84, %86 : vector<64x16xf32>
    %cst_97 = arith.constant 0.000000e+00 : f32
    %88 = vector.broadcast %cst_97 : f32 to vector<64x16xf32>
    %89 = arith.maximumf %87, %88 : vector<64x16xf32>
    %90 = arith.truncf %89 : vector<64x16xf32> to vector<64x16xbf16>
    %91 = vector.shape_cast %90 : vector<64x16xbf16> to vector<8x8x16xbf16>
    %c1_98 = arith.constant 1 : index
    %c1_99 = arith.constant 1 : index
    %c0_100 = arith.constant 0 : index
    %92 = vector.load %arg11[%c1_98, %c1_99, %c0_100] : memref<10x10x16xbf16, #tpu.memory_space<vmem>>, vector<8x8x16xbf16>
    tpu.vector_store %arg11[%c1_98, %c1_99, %c0_100], %91 {strides = array<i32>} : memref<10x10x16xbf16, #tpu.memory_space<vmem>>, vector<8x8x16xbf16>,
    %c0_101 = arith.constant 0 : index
    %c0_102 = arith.constant 0 : index
    %c0_103 = arith.constant 0 : index
    %93 = vector.load %arg11[%c0_101, %c0_102, %c0_103] : memref<10x10x16xbf16, #tpu.memory_space<vmem>>, vector<8x8x16xbf16>
    %94 = vector.shape_cast %93 : vector<8x8x16xbf16> to vector<64x16xbf16>
    %c0_104 = arith.constant 0 : index
    %c0_105 = arith.constant 0 : index
    %c0_106 = arith.constant 0 : index
    %95 = vector.load %arg3[%c0_104, %c0_105, %c0_106] : memref<9x16x16xbf16, #tpu.memory_space<vmem>>, vector<1x16x16xbf16>
    %96 = vector.shape_cast %95 : vector<1x16x16xbf16> to vector<16x16xbf16>
    %cst_107 = arith.constant dense<0.000000e+00> : vector<64x16xf32>
    %97 = tpu.matmul %94, %96, %cst_107 {dimension_numbers = #tpu.dot_dimension_numbers<[1], [0], [0], [1], [0, 0, 1, 1], [], []>} : vector<64x16xbf16>, vector<16x16xbf16>, vector<64x16xf32> -> vector<64x16xf32>
    %98 = arith.addf %53, %97 : vector<64x16xf32>
    %c0_108 = arith.constant 0 : index
    %c1_109 = arith.constant 1 : index
    %c0_110 = arith.constant 0 : index
    %99 = vector.load %arg11[%c0_108, %c1_109, %c0_110] : memref<10x10x16xbf16, #tpu.memory_space<vmem>>, vector<8x8x16xbf16>
    %100 = vector.shape_cast %99 : vector<8x8x16xbf16> to vector<64x16xbf16>
    %c1_111 = arith.constant 1 : index
    %c0_112 = arith.constant 0 : index
    %c0_113 = arith.constant 0 : index
    %101 = vector.load %arg3[%c1_111, %c0_112, %c0_113] : memref<9x16x16xbf16, #tpu.memory_space<vmem>>, vector<1x16x16xbf16>
    %102 = vector.shape_cast %101 : vector<1x16x16xbf16> to vector<16x16xbf16>
    %cst_114 = arith.constant dense<0.000000e+00> : vector<64x16xf32>
    %103 = tpu.matmul %100, %102, %cst_114 {dimension_numbers = #tpu.dot_dimension_numbers<[1], [0], [0], [1], [0, 0, 1, 1], [], []>} : vector<64x16xbf16>, vector<16x16xbf16>, vector<64x16xf32> -> vector<64x16xf32>
    %104 = arith.addf %98, %103 : vector<64x16xf32>
    %c0_115 = arith.constant 0 : index
    %c2_116 = arith.constant 2 : index
    %c0_117 = arith.constant 0 : index
    %105 = vector.load %arg11[%c0_115, %c2_116, %c0_117] : memref<10x10x16xbf16, #tpu.memory_space<vmem>>, vector<8x8x16xbf16>
    %106 = vector.shape_cast %105 : vector<8x8x16xbf16> to vector<64x16xbf16>
    %c2_118 = arith.constant 2 : index
    %c0_119 = arith.constant 0 : index
    %c0_120 = arith.constant 0 : index
    %107 = vector.load %arg3[%c2_118, %c0_119, %c0_120] : memref<9x16x16xbf16, #tpu.memory_space<vmem>>, vector<1x16x16xbf16>
    %108 = vector.shape_cast %107 : vector<1x16x16xbf16> to vector<16x16xbf16>
    %cst_121 = arith.constant dense<0.000000e+00> : vector<64x16xf32>
    %109 = tpu.matmul %106, %108, %cst_121 {dimension_numbers = #tpu.dot_dimension_numbers<[1], [0], [0], [1], [0, 0, 1, 1], [], []>} : vector<64x16xbf16>, vector<16x16xbf16>, vector<64x16xf32> -> vector<64x16xf32>
    %110 = arith.addf %104, %109 : vector<64x16xf32>
    %c1_122 = arith.constant 1 : index
    %c0_123 = arith.constant 0 : index
    %c0_124 = arith.constant 0 : index
    %111 = vector.load %arg11[%c1_122, %c0_123, %c0_124] : memref<10x10x16xbf16, #tpu.memory_space<vmem>>, vector<8x8x16xbf16>
    %112 = vector.shape_cast %111 : vector<8x8x16xbf16> to vector<64x16xbf16>
    %c3_125 = arith.constant 3 : index
    %c0_126 = arith.constant 0 : index
    %c0_127 = arith.constant 0 : index
    %113 = vector.load %arg3[%c3_125, %c0_126, %c0_127] : memref<9x16x16xbf16, #tpu.memory_space<vmem>>, vector<1x16x16xbf16>
    %114 = vector.shape_cast %113 : vector<1x16x16xbf16> to vector<16x16xbf16>
    %cst_128 = arith.constant dense<0.000000e+00> : vector<64x16xf32>
    %115 = tpu.matmul %112, %114, %cst_128 {dimension_numbers = #tpu.dot_dimension_numbers<[1], [0], [0], [1], [0, 0, 1, 1], [], []>} : vector<64x16xbf16>, vector<16x16xbf16>, vector<64x16xf32> -> vector<64x16xf32>
    %116 = arith.addf %110, %115 : vector<64x16xf32>
    %c1_129 = arith.constant 1 : index
    %c1_130 = arith.constant 1 : index
    %c0_131 = arith.constant 0 : index
    %117 = vector.load %arg11[%c1_129, %c1_130, %c0_131] : memref<10x10x16xbf16, #tpu.memory_space<vmem>>, vector<8x8x16xbf16>
    %118 = vector.shape_cast %117 : vector<8x8x16xbf16> to vector<64x16xbf16>
    %c4_132 = arith.constant 4 : index
    %c0_133 = arith.constant 0 : index
    %c0_134 = arith.constant 0 : index
    %119 = vector.load %arg3[%c4_132, %c0_133, %c0_134] : memref<9x16x16xbf16, #tpu.memory_space<vmem>>, vector<1x16x16xbf16>
    %120 = vector.shape_cast %119 : vector<1x16x16xbf16> to vector<16x16xbf16>
    %cst_135 = arith.constant dense<0.000000e+00> : vector<64x16xf32>
    %121 = tpu.matmul %118, %120, %cst_135 {dimension_numbers = #tpu.dot_dimension_numbers<[1], [0], [0], [1], [0, 0, 1, 1], [], []>} : vector<64x16xbf16>, vector<16x16xbf16>, vector<64x16xf32> -> vector<64x16xf32>
    %122 = arith.addf %116, %121 : vector<64x16xf32>
    %c1_136 = arith.constant 1 : index
    %c2_137 = arith.constant 2 : index
    %c0_138 = arith.constant 0 : index
    %123 = vector.load %arg11[%c1_136, %c2_137, %c0_138] : memref<10x10x16xbf16, #tpu.memory_space<vmem>>, vector<8x8x16xbf16>
    %124 = vector.shape_cast %123 : vector<8x8x16xbf16> to vector<64x16xbf16>
    %c5_139 = arith.constant 5 : index
    %c0_140 = arith.constant 0 : index
    %c0_141 = arith.constant 0 : index
    %125 = vector.load %arg3[%c5_139, %c0_140, %c0_141] : memref<9x16x16xbf16, #tpu.memory_space<vmem>>, vector<1x16x16xbf16>
    %126 = vector.shape_cast %125 : vector<1x16x16xbf16> to vector<16x16xbf16>
    %cst_142 = arith.constant dense<0.000000e+00> : vector<64x16xf32>
    %127 = tpu.matmul %124, %126, %cst_142 {dimension_numbers = #tpu.dot_dimension_numbers<[1], [0], [0], [1], [0, 0, 1, 1], [], []>} : vector<64x16xbf16>, vector<16x16xbf16>, vector<64x16xf32> -> vector<64x16xf32>
    %128 = arith.addf %122, %127 : vector<64x16xf32>
    %c2_143 = arith.constant 2 : index
    %c0_144 = arith.constant 0 : index
    %c0_145 = arith.constant 0 : index
    %129 = vector.load %arg11[%c2_143, %c0_144, %c0_145] : memref<10x10x16xbf16, #tpu.memory_space<vmem>>, vector<8x8x16xbf16>
    %130 = vector.shape_cast %129 : vector<8x8x16xbf16> to vector<64x16xbf16>
    %c6_146 = arith.constant 6 : index
    %c0_147 = arith.constant 0 : index
    %c0_148 = arith.constant 0 : index
    %131 = vector.load %arg3[%c6_146, %c0_147, %c0_148] : memref<9x16x16xbf16, #tpu.memory_space<vmem>>, vector<1x16x16xbf16>
    %132 = vector.shape_cast %131 : vector<1x16x16xbf16> to vector<16x16xbf16>
    %cst_149 = arith.constant dense<0.000000e+00> : vector<64x16xf32>
    %133 = tpu.matmul %130, %132, %cst_149 {dimension_numbers = #tpu.dot_dimension_numbers<[1], [0], [0], [1], [0, 0, 1, 1], [], []>} : vector<64x16xbf16>, vector<16x16xbf16>, vector<64x16xf32> -> vector<64x16xf32>
    %134 = arith.addf %128, %133 : vector<64x16xf32>
    %c2_150 = arith.constant 2 : index
    %c1_151 = arith.constant 1 : index
    %c0_152 = arith.constant 0 : index
    %135 = vector.load %arg11[%c2_150, %c1_151, %c0_152] : memref<10x10x16xbf16, #tpu.memory_space<vmem>>, vector<8x8x16xbf16>
    %136 = vector.shape_cast %135 : vector<8x8x16xbf16> to vector<64x16xbf16>
    %c7_153 = arith.constant 7 : index
    %c0_154 = arith.constant 0 : index
    %c0_155 = arith.constant 0 : index
    %137 = vector.load %arg3[%c7_153, %c0_154, %c0_155] : memref<9x16x16xbf16, #tpu.memory_space<vmem>>, vector<1x16x16xbf16>
    %138 = vector.shape_cast %137 : vector<1x16x16xbf16> to vector<16x16xbf16>
    %cst_156 = arith.constant dense<0.000000e+00> : vector<64x16xf32>
    %139 = tpu.matmul %136, %138, %cst_156 {dimension_numbers = #tpu.dot_dimension_numbers<[1], [0], [0], [1], [0, 0, 1, 1], [], []>} : vector<64x16xbf16>, vector<16x16xbf16>, vector<64x16xf32> -> vector<64x16xf32>
    %140 = arith.addf %134, %139 : vector<64x16xf32>
    %c2_157 = arith.constant 2 : index
    %c2_158 = arith.constant 2 : index
    %c0_159 = arith.constant 0 : index
    %141 = vector.load %arg11[%c2_157, %c2_158, %c0_159] : memref<10x10x16xbf16, #tpu.memory_space<vmem>>, vector<8x8x16xbf16>
    %142 = vector.shape_cast %141 : vector<8x8x16xbf16> to vector<64x16xbf16>
    %c8_160 = arith.constant 8 : index
    %c0_161 = arith.constant 0 : index
    %c0_162 = arith.constant 0 : index
    %143 = vector.load %arg3[%c8_160, %c0_161, %c0_162] : memref<9x16x16xbf16, #tpu.memory_space<vmem>>, vector<1x16x16xbf16>
    %144 = vector.shape_cast %143 : vector<1x16x16xbf16> to vector<16x16xbf16>
    %cst_163 = arith.constant dense<0.000000e+00> : vector<64x16xf32>
    %145 = tpu.matmul %142, %144, %cst_163 {dimension_numbers = #tpu.dot_dimension_numbers<[1], [0], [0], [1], [0, 0, 1, 1], [], []>} : vector<64x16xbf16>, vector<16x16xbf16>, vector<64x16xf32> -> vector<64x16xf32>
    %146 = arith.addf %140, %145 : vector<64x16xf32>
    %147 = vector.shape_cast %146 : vector<64x16xf32> to vector<8x8x16xf32>
    %c0_164 = arith.constant 0 : index
    %c0_165 = arith.constant 0 : index
    %c0_166 = arith.constant 0 : index
    %c0_167 = arith.constant 0 : index
    %148 = vector.load %arg9[%c0_164, %c0_165, %c0_166, %c0_167] : memref<1x8x8x16xf32, #tpu.memory_space<vmem>>, vector<1x8x8x16xf32>
    %149 = vector.shape_cast %148 : vector<1x8x8x16xf32> to vector<8x8x16xf32>
    %150 = vector.shape_cast %147 : vector<8x8x16xf32> to vector<1x8x8x16xf32>
    tpu.vector_store %arg9[%c0_164, %c0_165, %c0_166, %c0_167], %150 {strides = array<i32>} : memref<1x8x8x16xf32, #tpu.memory_space<vmem>>, vector<1x8x8x16xf32>,
    return
  }
  func.func @transform_0(%arg0: i32) -> (i32, i32, i32, i32, i32) {
    %c0_i32 = arith.constant 0 : i32
    %c0_i32_0 = arith.constant 0 : i32
    %c0_i32_1 = arith.constant 0 : i32
    %c0_i32_2 = arith.constant 0 : i32
    %c0_i32_3 = arith.constant 0 : i32
    return %arg0, %c0_i32, %c0_i32_0, %c0_i32_1, %c0_i32_2 : i32, i32, i32, i32, i32
  }
  func.func @transform_1(%arg0: i32) -> (i32, i32, i32) {
    %c0_i32 = arith.constant 0 : i32
    %c0_i32_0 = arith.constant 0 : i32
    %c0_i32_1 = arith.constant 0 : i32
    %c0_i32_2 = arith.constant 0 : i32
    return %c0_i32, %c0_i32_0, %c0_i32_1 : i32, i32, i32
  }
  func.func @transform_2(%arg0: i32) -> (i32, i32, i32) {
    %c0_i32 = arith.constant 0 : i32
    %c0_i32_0 = arith.constant 0 : i32
    %c0_i32_1 = arith.constant 0 : i32
    %c0_i32_2 = arith.constant 0 : i32
    return %c0_i32, %c0_i32_0, %c0_i32_1 : i32, i32, i32
  }
  func.func @transform_3(%arg0: i32) -> (i32, i32) {
    %c0_i32 = arith.constant 0 : i32
    %c0_i32_0 = arith.constant 0 : i32
    %c0_i32_1 = arith.constant 0 : i32
    return %c0_i32, %c0_i32_0 : i32, i32
  }
  func.func @transform_4(%arg0: i32) -> (i32, i32, i32, i32) {
    %c0_i32 = arith.constant 0 : i32
    %c0_i32_0 = arith.constant 0 : i32
    %c0_i32_1 = arith.constant 0 : i32
    %c0_i32_2 = arith.constant 0 : i32
    %c0_i32_3 = arith.constant 0 : i32
    return %c0_i32, %c0_i32_0, %c0_i32_1, %c0_i32_2 : i32, i32, i32, i32
  }
  func.func @transform_5(%arg0: i32) -> (i32, i32, i32, i32) {
    %c0_i32 = arith.constant 0 : i32
    %c0_i32_0 = arith.constant 0 : i32
    %c0_i32_1 = arith.constant 0 : i32
    %c0_i32_2 = arith.constant 0 : i32
    %c0_i32_3 = arith.constant 0 : i32
    return %c0_i32, %c0_i32_0, %c0_i32_1, %c0_i32_2 : i32, i32, i32, i32
  }
  func.func @transform_6(%arg0: i32) -> (i32, i32) {
    %c0_i32 = arith.constant 0 : i32
    %c0_i32_0 = arith.constant 0 : i32
    %c0_i32_1 = arith.constant 0 : i32
    return %c0_i32, %c0_i32_0 : i32, i32
  }
  func.func @transform_7(%arg0: i32) -> (i32, i32) {
    %c0_i32 = arith.constant 0 : i32
    %c0_i32_0 = arith.constant 0 : i32
    %c0_i32_1 = arith.constant 0 : i32
    return %c0_i32, %c0_i32_0 : i32, i32
  }
  func.func @transform_8(%arg0: i32) -> (i32, i32, i32, i32) {
    %c0_i32 = arith.constant 0 : i32
    %c0_i32_0 = arith.constant 0 : i32
    %c0_i32_1 = arith.constant 0 : i32
    %c0_i32_2 = arith.constant 0 : i32
    return %arg0, %c0_i32, %c0_i32_0, %c0_i32_1 : i32, i32, i32, i32
  }
}

</mosaic_0001>

<bundles_post_ra>
// kernel: basic_block_forward.1
= control target key start
LH: loop header
LB: loop body
LE: loop exit
PB: predicated region body
PF: predicated region fallthrough
CT: control target
= control target key end

     0   :  { %13 = vsyncpa [#allocation5], 0  ;;  %s5924_s0 = inlined_call_operand.vmem [shape: f32[2,8,2,8,16], index: 0, kind: input, shape index: {}]   ;;  %s5925_s1 = inlined_call_operand.vmem [shape: bf16[9,8,16], index: 1, kind: input, shape index: {}]   ;;  %s5926_s2 = inlined_call_operand.vmem [shape: bf16[9,16,16], index: 2, kind: input, shape index: {}]   ;;  %s5927_s3 = inlined_call_operand.vmem [shape: bf16[8,16], index: 3, kind: input, shape index: {}]   ;;  %s5928_s4 = inlined_call_operand.vmem [shape: f32[1,1,1,16], index: 4, kind: input, shape index: {}]   ;;  %s5929_s5 = inlined_call_operand.vmem [shape: f32[1,1,1,16], index: 5, kind: input, shape index: {}]   ;;  %s5930_s6 = inlined_call_operand.vmem [shape: f32[1,16], index: 6, kind: input, shape index: {}]   ;;  %s5931_s7 = inlined_call_operand.vmem [shape: f32[1,16], index: 7, kind: input, shape index: {}]   ;;  %s5932_s8 = inlined_call_operand.hbm [shape: f32[2,8,8,16], index: 8, kind: output, shape index: {}]  }
   0x1   :  { %15 = vsyncpa [#allocation5 + $0x1], 0  ;;  %s4924_s27 = smov 0   ;;  %s4926_s28 = smov 0  }
   0x2   :  { %s4928_s29 = smov 0   ;;  %s4930_s30 = smov 0  }
   0x3 LB: > { %s4945_s9 = sadd.s32 4294967295, %s4872_s30   ;;  %s4042_s10 = sadd.s32 4294967294, %s4872_s30   ;;  %s4872_s30 = sphi %s4930_s30, %s5946_s30   ;;  %s4868_s29 = sphi %s4928_s29, %s5945_s29   ;;  %s4864_s28 = sphi %s4926_s28, %s5944_s28   ;;  %s4860_s27 = sphi %s4924_s27, %s5943_s27  }
   0x4   : > { %s4949_s11 = sadd.s32 1, %s4872_s30   ;;  %s201_s12 = sadd.s32 1, %s4868_s29 }
   0x5   : > { %s198_s13 = ssub.s32 %s4872_s30, %s4949_s11  ;;  %p211_p0 = scmp.ne.s32.totalorder %s4868_s29, %s4864_s28 }
   0x6   : > { %p199_p1 = scmp.eq.s32.totalorder %s198_s13, 0  ;;  %p212_p2 = scmp.eq.s32.totalorder %s4945_s9, 1 }
   0x7   : > { %p217_p3 = scmp.ne.s32.totalorder %s4864_s28, %s4860_s27  ;;  %p218_p4 = scmp.eq.s32.totalorder %s4042_s10, 1 }
   0x8   : > { %s4960_s14 = scalar_select %p199_p1, %s4868_s29, %s201_s12  }
   0x9   : > { %p4962_p5 = por %p212_p2, %p211_p0  ;;  %p4966_p6 = por %p218_p4, %p217_p3 }
   0xa   : > { %p4045_p7 = scmp.ge.s32.totalorder %s4872_s30, 1  ;;  %p265_p8 = scmp.lt.s32.totalorder %s4872_s30, 3 }
   0xc   : > { %p266_p9 = pnand %p4045_p7, %p265_p8 }
   0xd   : > { %p299_p10 = scmp.lt.s32.totalorder (!%p266_p9), %s4945_s9, 1  ;;  %vm305_vm0 = vcmask (!%p266_p9), 125952   ;;  %v4874_v0 = vmov (!%p266_p9), 0   ;;  %vm307_vm1 = vcmask (!%p266_p9), 122880   ;;  %vm308_vm2 = vsmask.f32 (!%p266_p9), 256 }
   0xe   : > { %269 = sbr.rel (%p266_p9) target bundleno = 920 (0x398), region = 52  ;;  %313 = vst.msk [vmem:[#allocation2 + $0x8] sm:$0xf] (!%p266_p9), %vm305_vm0, %v4874_v0  ;;  %321 = vst.msk [vmem:[#allocation2 + $0x18] sm:$0xf] (!%p266_p9), %vm305_vm0, %v4874_v0  ;;  %s4875_s26 = smov (!%p266_p9), 120  }
   0xf   : > { %317 = vst.msk [vmem:[#allocation2 + $0x10] sm:$0xf] (!%p266_p9), %vm305_vm0, %v4874_v0  ;;  %325 = vst.msk [vmem:[#allocation2 + $0x20] sm:$0xf] (!%p266_p9), %vm305_vm0, %v4874_v0  ;;  %v314_v1 = vld [vmem:[#allocation2 + $0xc] sm:$0x1] (!%p266_p9) }
  0x10   : > { %329 = vst.msk [vmem:[#allocation2 + $0x28] sm:$0xf] (!%p266_p9), %vm305_vm0, %v4874_v0  ;;  %333 = vst.msk [vmem:[#allocation2 + $0x30] sm:$0xf] (!%p266_p9), %vm305_vm0, %v4874_v0  ;;  %v5016_v2 = vld [vmem:[%s5928_s4] ss:$0 sm:$0xff] (!%p266_p9) }
  0x11   : > { %337 = vst.msk [vmem:[#allocation2 + $0x38] sm:$0xf] (!%p266_p9), %vm305_vm0, %v4874_v0  ;;  %341 = vst.msk [vmem:[#allocation2 + $0x40] sm:$0xf] (!%p266_p9), %vm305_vm0, %v4874_v0  ;;  %v322_v4 = vld [vmem:[#allocation2 + $0x1c] sm:$0x1] (!%p266_p9) }
  0x12   : > { %345 = vst.msk [vmem:[#allocation2 + $0x48] sm:$0xf] (!%p266_p9), %vm305_vm0, %v4874_v0  ;;  %349 = vst.msk [vmem:[#allocation2 + $0x50] sm:$0xf] (!%p266_p9), %vm305_vm0, %v4874_v0  ;;  %v5026_v5 = vld [vmem:[%s5929_s5] ss:$0 sm:$0xff] (!%p266_p9) }
  0x13   : > { %353 = vst.msk [vmem:[#allocation2 + $0x58] sm:$0xf] (!%p266_p9), %vm305_vm0, %v4874_v0  ;;  %357 = vst.msk [vmem:[#allocation2 + $0x60] sm:$0xf] (!%p266_p9), %vm305_vm0, %v4874_v0  ;;  %v330_v8 = vld [vmem:[#allocation2 + $0x2c] sm:$0x1] (!%p266_p9) }
  0x14   : > { %361 = vst.msk [vmem:[#allocation2 + $0x68] sm:$0xf] (!%p266_p9), %vm305_vm0, %v4874_v0  ;;  %365 = vst.msk [vmem:[#allocation2 + $0x70] sm:$0xf] (!%p266_p9), %vm305_vm0, %v4874_v0  ;;  %v338_v10 = vld [vmem:[#allocation2 + $0x3c] sm:$0x1] (!%p266_p9) }
  0x15   : > { %369 = vst.msk [vmem:[#allocation2 + $0x78] sm:$0xf] %vm305_vm0, %v4874_v0  ;;  %373 = vst.msk [vmem:[#allocation2 + $0x80] sm:$0xf] %vm305_vm0, %v4874_v0  ;;  %s300_s17 = scalar_select %p299_p10, %s4945_s9, 1  ;;  %vm951_vm9 = vcmask 64512  }
  0x16   : > { %377 = vst.msk [vmem:[#allocation2 + $0x88] sm:$0xf] %vm305_vm0, %v4874_v0  ;;  %381 = vst.msk [vmem:[#allocation3] sm:$0xf] %vm305_vm0, %v4874_v0  ;;  %v346_v11 = vld [vmem:[#allocation2 + $0x4c] sm:$0x1] }
  0x17   : > { %384 = vst.msk [vmem:[#allocation3 + $0x8] sm:$0xf] %vm305_vm0, %v4874_v0  ;;  %386 = vst.msk [vmem:[#allocation3 + $0x10] sm:$0xf] %vm305_vm0, %v4874_v0  ;;  %s4275_s20 = sshll.u32 %s300_s17, 7  ;;  %vm964_vm10 = vcmask 1043456  }
  0x18   : > { %388 = vst.msk [vmem:[#allocation3 + $0x18] sm:$0xf] %vm305_vm0, %v4874_v0  ;;  %390 = vst.msk [vmem:[#allocation3 + $0x20] sm:$0xf] %vm305_vm0, %v4874_v0  ;;  %s5035_s25 = scalar_lea.vmem %s5924_s0, %s4275_s20  ;;  %vm706_vm4 = vsmask.f32 7938 }
  0x19   : > { %392 = vst.msk [vmem:[#allocation3 + $0x28] sm:$0xf] %vm305_vm0, %v4874_v0  ;;  %394 = vst.msk [vmem:[#allocation3 + $0x30] sm:$0xf] %vm305_vm0, %v4874_v0  ;;  %v403_v12 = vld [vmem:[%s5035_s25 + $0x8] sm:$0xff]  ;;  %v405_v13 = vld [vmem:[%s5035_s25 + $0x18] sm:$0xff] }
  0x1a   : > { %396 = vst.msk [vmem:[#allocation3 + $0x38] sm:$0xf] %vm305_vm0, %v4874_v0  ;;  %398 = vst.msk [vmem:[#allocation3 + $0x40] sm:$0xf] %vm305_vm0, %v4874_v0  ;;  %v407_v14 = vld [vmem:[%s5035_s25 + $0x28] sm:$0xff]  ;;  %v426_v17 = vmul.f32 %v5016_v2, %v403_v12  ;;  %v428_v18 = vmul.f32 %v5016_v2, %v405_v13  ;;  %v409_v20 = vld [vmem:[%s5035_s25 + $0x38] sm:$0xff] }
  0x1b   : > { %400 = vst.msk [vmem:[#allocation3 + $0x48] sm:$0xf] %vm305_vm0, %v4874_v0  ;;  %vm5019_vm3 = vmand %vm307_vm1, %vm308_vm2  ;;  %v430_v19 = vmul.f32 %v5016_v2, %v407_v14  ;;  %v411_v21 = vld [vmem:[%s5035_s25 + $0x48] sm:$0xff]  ;;  %v413_v22 = vld [vmem:[%s5035_s25 + $0x58] sm:$0xff]  ;;  %v432_v24 = vmul.f32 %v5016_v2, %v409_v20  ;;  %vm822_vm5 = vsmask.f32 3328 }
  0x1c   : > { %383 = vst.msk [vmem:[#allocation3 + $0x4] sm:$0x1] %vm307_vm1, %v4874_v0  ;;  %385 = vst.msk [vmem:[#allocation3 + $0xc] sm:$0x1] %vm307_vm1, %v4874_v0  ;;  %v315_v6 = vsel %vm5019_vm3, 0, %v314_v1  ;;  %v323_v7 = vsel %vm5019_vm3, 0, %v322_v4  ;;  %v434_v25 = vmul.f32 %v5016_v2, %v411_v21  ;;  %v436_v26 = vmul.f32 %v5016_v2, %v413_v22 }
  0x1d   : > { %387 = vst.msk [vmem:[#allocation3 + $0x14] sm:$0x1] %vm307_vm1, %v4874_v0  ;;  %389 = vst.msk [vmem:[#allocation3 + $0x1c] sm:$0x1] %vm307_vm1, %v4874_v0  ;;  %v331_v9 = vsel %vm5019_vm3, 0, %v330_v8  ;;  %v339_v15 = vsel %vm5019_vm3, 0, %v338_v10  ;;  %v449_v27 = vadd.f32 %v5026_v5, %v426_v17  ;;  %v451_v30 = vadd.f32 %v5026_v5, %v428_v18 }
  0x1e   : > { %391 = vst.msk [vmem:[#allocation3 + $0x24] sm:$0x1] %vm307_vm1, %v4874_v0  ;;  %393 = vst.msk [vmem:[#allocation3 + $0x2c] sm:$0x1] %vm307_vm1, %v4874_v0  ;;  %v347_v16 = vsel %vm5019_vm3, 0, %v346_v11  ;;  %v453_v31 = vadd.f32 %v5026_v5, %v430_v19  ;;  %v455_v32 = vadd.f32 %v5026_v5, %v432_v24  ;;  %v457_v33 = vadd.f32 %v5026_v5, %v434_v25  ;;  %v415_v34 = vld [vmem:[%s5035_s25 + $0x68] sm:$0xff] }
  0x1f   : > { %395 = vst.msk [vmem:[#allocation3 + $0x34] sm:$0x1] %vm307_vm1, %v4874_v0  ;;  %397 = vst.msk [vmem:[#allocation3 + $0x3c] sm:$0x1] %vm307_vm1, %v4874_v0  ;;  %v5052_v23 = vld [vmem:[#allocation2 + $0x8] sm:$0xf]  ;;  %v459_v35 = vadd.f32 %v5026_v5, %v436_v26  ;;  %v438_v43 = vmul.f32 %v5016_v2, %v415_v34 }
  0x20   : > { %399 = vst.msk [vmem:[#allocation3 + $0x44] sm:$0x1] %vm307_vm1, %v4874_v0  ;;  %401 = vst.msk [vmem:[#allocation3 + $0x4c] sm:$0x1] %vm307_vm1, %v4874_v0  ;;  %v826_v28 = vshrl.u32 %v5052_v23, 16  ;;  %v829_v29 = vshll.u32 %v5052_v23, 16 }
  0x21   : > { %316 = vst [vmem:[#allocation2 + $0xc] sm:$0x1] %v315_v6  ;;  %324 = vst [vmem:[#allocation2 + $0x1c] sm:$0x1] %v323_v7  ;;  %v465_v36 = vmax.f32 %v449_v27, 0.0  ;;  %v467_v39 = vmax.f32 %v451_v30, 0.0  ;;  %v461_v51 = vadd.f32 %v5026_v5, %v438_v43 }
  0x22   : > { %332 = vst [vmem:[#allocation2 + $0x2c] sm:$0x1] %v331_v9  ;;  %340 = vst [vmem:[#allocation2 + $0x3c] sm:$0x1] %v339_v15  ;;  %v828_v37 = vrot.slane %v826_v28, 4  ;;  %v831_v38 = vrot.slane %v829_v29, 5 }
  0x23   : > { %348 = vst [vmem:[#allocation2 + $0x4c] sm:$0x1] %v347_v16  ;;  %v469_v40 = vmax.f32 %v453_v31, 0.0  ;;  %v471_v41 = vmax.f32 %v455_v32, 0.0  ;;  %v473_v42 = vmax.f32 %v457_v33, 0.0  ;;  %v4277_v44 = vpack.c.bf16 %v465_v36, %v465_v36  ;;  %vm5072_vm7 = vmand %vm305_vm0, %vm706_vm4  ;;  %v4794_v3 = vld [vmem:[%s5926_s2 + $0x8] sm:$0xff]  }
  0x24   : > { %v832_v45 = vor.u32 %v831_v38, %v828_v37  ;;  %v4279_v46 = vpack.c.bf16 %v467_v39, %v467_v39  ;;  %v475_v47 = vmax.f32 %v459_v35, 0.0  ;;  %vm823_vm6 = vsmask.f32 7440  ;;  %v714_v56 = vld [vmem:[#allocation2 + $0x18] sm:$0xf]  ;;  %s296_s17 = sand.u32 1, %s4864_s28  }
  0x25   : > { %v4281_v48 = vpack.c.bf16 %v469_v40, %v469_v40  ;;  %v4283_v49 = vpack.c.bf16 %v471_v41, %v471_v41  ;;  %v4285_v50 = vpack.c.bf16 %v473_v42, %v473_v42  ;;  %v553_v52 = vshrl.u32 %v4277_v44, 16  ;;  %v726_v63 = vld [vmem:[#allocation2 + $0x28] sm:$0xf]  ;;  %v738_v7 = vld [vmem:[#allocation2 + $0x38] sm:$0xf]  ;;  %vm5099_vm8 = vmor %vm822_vm5, %vm823_vm6  ;;  %s4046_s18 = sshll.u32 %s296_s17, 6 }
  0x26   : > { %v556_v53 = vshll.u32 %v4277_v44, 16  ;;  %v5068_v54 = vrot.slane %v832_v45, 4  ;;  %v569_v55 = vshrl.u32 %v4279_v46, 16  ;;  %v572_v57 = vshll.u32 %v4279_v46, 16  ;;  %v750_v15 = vld [vmem:[#allocation2 + $0x48] sm:$0xf] }
  0x27   : > { %v585_v58 = vshrl.u32 %v4281_v48, 16  ;;  %v588_v59 = vshll.u32 %v4281_v48, 16  ;;  %v601_v60 = vshrl.u32 %v4283_v49, 16  ;;  %v555_v61 = vrot.slane %v553_v52, 7  ;;  %v762_v21 = vld [vmem:[#allocation2 + $0x58] sm:$0xf] }
  0x28   : > { %v571_v62 = vrot.slane %v569_v55, 7  ;;  %v604_v0 = vshll.u32 %v4283_v49, 16  ;;  %v617_v1 = vshrl.u32 %v4285_v50, 16  ;;  %v620_v9 = vshll.u32 %v4285_v50, 16  ;;  %v717_v16 = vld [vmem:[#allocation2 + $0x1c] sm:$0x1] }
  0x29   : > { %v587_v6 = vrot.slane %v585_v58, 7  ;;  %v603_v8 = vrot.slane %v601_v60, 7  ;;  %v477_v10 = vmax.f32 %v461_v51, 0.0  ;;  %v558_v11 = vor.u32 %v556_v53, %v555_v61  ;;  %v814_v27 = vld [vmem:[#allocation2 + $0xc] sm:$0x1]  ;;  %v402_v46 = vld [vmem:[%s5035_s25] sm:$0xff] }
  0x2a   : > { %v559_v12 = vrot.slane %v555_v61, 4  ;;  %v574_v13 = vor.u32 %v572_v57, %v571_v62  ;;  %v575_v14 = vrot.slane %v571_v62, 4  ;;  %v5080_v25 = vrot.slane %v617_v1, 7  ;;  %v729_v28 = vld [vmem:[#allocation2 + $0x2c] sm:$0x1]  ;;  %v404_v53 = vld [vmem:[%s5035_s25 + $0x10] sm:$0xff] }
  0x2b   : > { %v590_v17 = vor.u32 %v588_v59, %v587_v6  ;;  %v591_v18 = vrot.slane %v587_v6, 4  ;;  %v606_v19 = vor.u32 %v604_v0, %v603_v8  ;;  %v607_v20 = vrot.slane %v603_v8, 4  ;;  %v741_v33 = vld [vmem:[#allocation2 + $0x3c] sm:$0x1]  ;;  %v753_v35 = vld [vmem:[#allocation2 + $0x4c] sm:$0x1] }
  0x2c   : > { %v715_v22 = vsel %vm5072_vm7, %v558_v11, %v714_v56  ;;  %v727_v24 = vsel %vm5072_vm7, %v574_v13, %v726_v63  ;;  %v4287_v26 = vpack.c.bf16 %v475_v47, %v475_v47  ;;  %v4289_v31 = vpack.c.bf16 %v477_v10, %v477_v10  ;;  %v354_v34 = vld [vmem:[#allocation2 + $0x5c] sm:$0x1]  ;;  %v362_v40 = vld [vmem:[#allocation2 + $0x6c] sm:$0x1]  ;;  %v774_v49 = vld [vmem:[#allocation2 + $0x68] sm:$0xf] }
  0x2d   : > { %716 = vst [vmem:[#allocation2 + $0x18] sm:$0xf] %v715_v22  ;;  %728 = vst [vmem:[#allocation2 + $0x28] sm:$0xf] %v727_v24  ;;  %v739_v29 = vsel %vm5072_vm7, %v590_v17, %v738_v7  ;;  %v751_v30 = vsel %vm5072_vm7, %v606_v19, %v750_v15  ;;  %v718_v32 = vsel %vm5019_vm3, %v559_v12, %v717_v16  ;;  %v623_v37 = vrot.slane %v5080_v25, 4  ;;  %v406_v59 = vld [vmem:[%s5035_s25 + $0x20] sm:$0xff] }
  0x2e   : > { %740 = vst [vmem:[#allocation2 + $0x38] sm:$0xf] %v739_v29  ;;  %v622_v36 = vor.u32 %v620_v9, %v5080_v25  ;;  %752 = vst [vmem:[#allocation2 + $0x48] sm:$0xf] %v751_v30  ;;  %v633_v38 = vshrl.u32 %v4287_v26, 16  ;;  %v636_v39 = vshll.u32 %v4287_v26, 16  ;;  %v730_v44 = vsel %vm5019_vm3, %v575_v14, %v729_v28 }
  0x2f   : > { %719 = vst [vmem:[#allocation2 + $0x1c] sm:$0x1] %v718_v32  ;;  %v649_v41 = vshrl.u32 %v4289_v31, 16  ;;  %v652_v42 = vshll.u32 %v4289_v31, 16  ;;  %v835_v43 = vshll.u32 %v814_v27, 16  ;;  %v742_v51 = vsel %vm5019_vm3, %v591_v18, %v741_v33  ;;  %v408_v60 = vld [vmem:[%s5035_s25 + $0x30] sm:$0xff] }
  0x30   : > { %v370_v45 = vld [vmem:[#allocation2 + $0x7c] sm:$0x1]  ;;  %v763_v47 = vsel %vm5072_vm7, %v622_v36, %v762_v21  ;;  %v5095_v48 = vrot.slane %v633_v38, 7  ;;  %731 = vst [vmem:[#allocation2 + $0x2c] sm:$0x1] %v730_v44  ;;  %v355_v52 = vsel %vm5019_vm3, 0, %v354_v34  ;;  %v754_v57 = vsel %vm5019_vm3, %v607_v20, %v753_v35 }
  0x31   : > { %764 = vst [vmem:[#allocation2 + $0x58] sm:$0xf] %v763_v47  ;;  %v5108_v55 = vrot.slane %v649_v41, 7  ;;  %v5110_v56 = vrot.slane %v835_v43, 5  ;;  %743 = vst [vmem:[#allocation2 + $0x3c] sm:$0x1] %v742_v51  ;;  %v425_v0 = vmul.f32 %v5016_v2, %v402_v46  ;;  %v5130_v8 = vmul.f32 %v5016_v2, %v404_v53 }
  0x32   : > { %356 = vst [vmem:[#allocation2 + $0x5c] sm:$0x1] %v355_v52  ;;  %v363_v58 = vsel %vm5019_vm3, 0, %v362_v40  ;;  %v638_v61 = vor.u32 %v636_v39, %v5095_v48  ;;  %v639_v62 = vrot.slane %v5095_v48, 4  ;;  %755 = vst [vmem:[#allocation2 + $0x4c] sm:$0x1] %v754_v57  ;;  %v5138_v13 = vmul.f32 %v5016_v2, %v406_v59 }
  0x33   : > { %364 = vst [vmem:[#allocation2 + $0x6c] sm:$0x1] %v363_v58  ;;  %v371_v63 = vsel %vm5019_vm3, 0, %v370_v45  ;;  %v654_v1 = vor.u32 %v652_v42, %v5108_v55  ;;  %v655_v6 = vrot.slane %v5108_v55, 4  ;;  %v838_v7 = vsel %vm5099_vm8, %v5068_v54, %v5110_v56  ;;  %v786_v20 = vld [vmem:[#allocation2 + $0x78] sm:$0xf] }
  0x34   : > { %372 = vst [vmem:[#allocation2 + $0x7c] sm:$0x1] %v371_v63  ;;  %v806_v9 = vld [vmem:[#allocation2 + $0x18] sm:$0xf]  ;;  %v807_v10 = vld [vmem:[#allocation2 + $0x28] sm:$0xf]  ;;  %v775_v11 = vsel %vm5072_vm7, %v638_v61, %v774_v49  ;;  %v5135_v12 = vadd.f32 %v5026_v5, %v425_v0  ;;  %v5141_v14 = vmul.f32 %v5016_v2, %v408_v60  ;;  %v450_v25 = vadd.f32 %v5026_v5, %v5130_v8 }
  0x35   : > { %v4076_v15 = vcombine.low %v5052_v23, %v806_v9  ;;  %v840_v16 = vshrl.u32 %v806_v9, 16  ;;  %v843_v17 = vshll.u32 %v806_v9, 16  ;;  %v808_v18 = vld [vmem:[#allocation2 + $0x38] sm:$0xf]  ;;  %v854_v19 = vshrl.u32 %v807_v10, 16  ;;  %s298_s19 = scalar_lea.vmem [#allocation4], %s4046_s18 }
  0x36   : > { %776 = vst [vmem:[#allocation2 + $0x68] sm:$0xf] %v775_v11  ;;  %v857_v21 = vshll.u32 %v807_v10, 16  ;;  %v868_v22 = vshrl.u32 %v808_v18, 16  ;;  %v871_v24 = vshll.u32 %v808_v18, 16  ;;  %v4077_v26 = vcombine.low %v807_v10, %v808_v18  ;;  %s4300_s20 = sshll.u32 %s4945_s9, 10 }
  0x37   : > { %v809_v27 = vld [vmem:[#allocation2 + $0x48] sm:$0xf]  ;;  %1053 = vrot.lane.b32.xlu0 %v4076_v15, %s4875_s26  ;;  %v842_v28 = vrot.slane %v840_v16, 4  ;;  %v845_v29 = vrot.slane %v843_v17, 5  ;;  %v856_v30 = vrot.slane %v854_v19, 4  ;;  %v787_v45 = vsel %vm5072_vm7, %v654_v1, %v786_v20  ;;  %s3980_s21 = sshll.u32 %s298_s19, 4  ;;  %s5876_s24 = scalar_lea.hbm %s5932_s8, %s4300_s20  ;;  %s5878_s21 = int_to_ptr.vmem [resolvable:$true] %s3980_s21 }
  0x38   : > { %v882_v31 = vshrl.u32 %v809_v27, 16  ;;  %v815_v32 = vld [vmem:[#allocation2 + $0x1c] sm:$0x1]  ;;  %v859_v23 = vrot.slane %v857_v21, 5  ;;  %v870_v33 = vrot.slane %v868_v22, 4  ;;  %v873_v34 = vrot.slane %v871_v24, 5 }
  0x39   : > { %v810_v35 = vld [vmem:[#allocation2 + $0x58] sm:$0xf]  ;;  %v885_v36 = vshll.u32 %v809_v27, 16  ;;  %v846_v38 = vor.u32 %v845_v29, %v842_v28  ;;  %v816_v42 = vld [vmem:[#allocation2 + $0x2c] sm:$0x1]  ;;  %v849_v46 = vshll.u32 %v815_v32, 16  ;;  %v452_v55 = vadd.f32 %v5026_v5, %v5138_v13 }
  0x3a   : > { %v896_v39 = vshrl.u32 %v810_v35, 16  ;;  %v899_v40 = vshll.u32 %v810_v35, 16  ;;  %v4078_v41 = vcombine.low %v809_v27, %v810_v35  ;;  %v884_v43 = vrot.slane %v882_v31, 4  ;;  %788 = vst [vmem:[#allocation2 + $0x78] sm:$0xf] %v787_v45  ;;  %s5883_s9 = scalar_lea.sflag [#allocation5], %s296_s17 }
  0x3b   : > { %v887_v44 = vrot.slane %v885_v36, 5  ;;  %v847_v47 = vrot.slane %v846_v38, 4  ;;  %1055 = vrot.lane.b32.xlu0 %v4077_v26, %s4875_s26  ;;  %v817_v52 = vld [vmem:[#allocation2 + $0x3c] sm:$0x1]  ;;  %v860_v53 = vor.u32 %v859_v23, %v856_v30  ;;  %v818_v58 = vld [vmem:[#allocation2 + $0x4c] sm:$0x1]  ;;  %v874_v0 = vor.u32 %v873_v34, %v870_v33 }
  0x3c   : > { %v898_v49 = vrot.slane %v896_v39, 4  ;;  %v901_v51 = vrot.slane %v899_v40, 5  ;;  %1057 = vrot.lane.b32.xlu1 %v4078_v41, %s4875_s26  ;;  %v765_v57 = vld [vmem:[#allocation2 + $0x5c] sm:$0x1]  ;;  %v851_v61 = vrot.slane %v849_v46, 5  ;;  %v863_v63 = vshll.u32 %v816_v42, 16 }
  0x3d   : > { %v888_v59 = vor.u32 %v887_v44, %v884_v43  ;;  %v811_v60 = vld [vmem:[#allocation2 + $0x68] sm:$0xf]  ;;  %v777_v1 = vld [vmem:[#allocation2 + $0x6c] sm:$0x1]  ;;  %v861_v15 = vrot.slane %v860_v53, 4  ;;  %v875_v20 = vrot.slane %v874_v0, 4  ;;  %v766_v29 = vsel %vm5019_vm3, %v623_v37, %v765_v57 }
  0x3e   : > { %v902_v9 = vor.u32 %v901_v51, %v898_v49  ;;  %v910_v10 = vshrl.u32 %v811_v60, 16  ;;  %v913_v11 = vshll.u32 %v811_v60, 16  ;;  %v789_v16 = vld [vmem:[#allocation2 + $0x7c] sm:$0x1]  ;;  %v852_v18 = vsel %vm5099_vm8, %v847_v47, %v851_v61  ;;  %767 = vst [vmem:[#allocation2 + $0x5c] sm:$0x1] %v766_v29 }
  0x3f   : > { %v5149_v17 = vrot.slane %v888_v59, 4  ;;  %v865_v19 = vrot.slane %v863_v63, 5  ;;  %v4068_v26 = vcombine.low %v838_v7, %v852_v18  ;;  %v877_v28 = vshll.u32 %v817_v52, 16  ;;  %v412_v38 = vld [vmem:[%s5035_s25 + $0x50] sm:$0xff]  ;;  %v5199_v42 = vld [vmem:[%s5925_s1 + $0x4] sm:$0xf] }
  0x40   : > { %v5153_v21 = vrot.slane %v902_v9, 4  ;;  %v912_v22 = vrot.slane %v910_v10, 4  ;;  %v915_v24 = vrot.slane %v913_v11, 5  ;;  %v891_v30 = vshll.u32 %v818_v58, 16  ;;  %4724 = vmatprep.subr.msk.bf16.mxu0 %vm964_vm10, %v5199_v42  ;;  %v708_v49 = vld [vmem:[#allocation2 + $0x10] sm:$0xf] }
  0x41   : > { %v866_v27 = vsel %vm5099_vm8, %v861_v15, %v865_v19  ;;  %1143 = vrot.lane.b32.xlu0 %v4068_v26, %s4875_s26  ;;  %v778_v31 = vsel %vm5019_vm3, %v639_v62, %v777_v1  ;;  %v790_v54 = vsel %vm5019_vm3, %v655_v6, %v789_v16  ;;  %v812_v7 = vld [vmem:[#allocation2 + $0x78] sm:$0xf]  ;;  %v879_v37 = vrot.slane %v877_v28, 5  ;;  %4398 = vmatprep.mubr.msk.bf16.mxu0 %vm951_vm9, %v4068_v26  ;;  %v720_v28 = vld [vmem:[#allocation2 + $0x20] sm:$0xf] }
  0x42   : > { %v916_v56 = vor.u32 %v915_v24, %v912_v22  ;;  %v5177_v32 = vrot.slane %v891_v30, 5  ;;  %779 = vst [vmem:[#allocation2 + $0x6c] sm:$0x1] %v778_v31  ;;  %791 = vst [vmem:[#allocation2 + $0x7c] sm:$0x1] %v790_v54  ;;  %v464_v48 = vmax.f32 %v5135_v12, 0.0  ;;  %v4079_v23 = vcombine.low %v811_v60, %v812_v7 }
  0x43   : > { %v924_v62 = vshrl.u32 %v812_v7, 16  ;;  %v927_v6 = vshll.u32 %v812_v7, 16  ;;  %v880_v8 = vsel %vm5099_vm8, %v875_v20, %v879_v37  ;;  %v466_v35 = vmax.f32 %v450_v25, 0.0  ;;  %v410_v12 = vld [vmem:[%s5035_s25 + $0x40] sm:$0xff]  ;;  %v732_v25 = vld [vmem:[#allocation2 + $0x30] sm:$0xf] }
  0x44   : > { %v917_v33 = vrot.slane %v916_v56, 4  ;;  %v894_v34 = vsel %vm5099_vm8, %v5149_v17, %v5177_v32  ;;  %v4276_v36 = vpack.c.bf16 %v464_v48, %v464_v48  ;;  %1059 = vrot.lane.b32.xlu1 %v4079_v23, %s4875_s26  ;;  %v5192_v40 = vcombine.low %v866_v27, %v880_v8 }
  0x45   : > { %v926_v39 = vrot.slane %v924_v62, 4  ;;  %v929_v13 = vrot.slane %v927_v6, 5  ;;  %v454_v41 = vadd.f32 %v5026_v5, %v5141_v14  ;;  %v4278_v43 = vpack.c.bf16 %v466_v35, %v466_v35  ;;  %v819_v14 = vld [vmem:[#allocation2 + $0x5c] sm:$0x1]  ;;  %v318_v62 = vld [vmem:[#allocation2 + $0x14] sm:$0x1] }
  0x46   : > { %v545_v44 = vshrl.u32 %v4276_v36, 16  ;;  %v548_v45 = vshll.u32 %v4276_v36, 16  ;;  %v468_v46 = vmax.f32 %v452_v55, 0.0  ;;  %v433_v52 = vmul.f32 %v5016_v2, %v410_v12  ;;  %v414_v55 = vld [vmem:[%s5035_s25 + $0x60] sm:$0xff]  ;;  %v334_v36 = vld [vmem:[#allocation2 + $0x34] sm:$0x1] }
  0x47   : > { %v930_v47 = vor.u32 %v929_v13, %v926_v39  ;;  %v470_v51 = vmax.f32 %v454_v41, 0.0  ;;  %v435_v53 = vmul.f32 %v5016_v2, %v412_v38  ;;  %v561_v58 = vshrl.u32 %v4278_v43, 16  ;;  %v326_v35 = vld [vmem:[#allocation2 + $0x24] sm:$0x1] }
  0x48   : > { %v5205_v57 = vrot.slane %v545_v44, 7  ;;  %v564_v59 = vshll.u32 %v4278_v43, 16  ;;  %v4280_v60 = vpack.c.bf16 %v468_v46, %v468_v46  ;;  %1145 = vrot.lane.b32.xlu1 %v5192_v40, %s4875_s26  ;;  %v905_v61 = vshll.u32 %v819_v14, 16  ;;  %v342_v13 = vld [vmem:[#allocation2 + $0x44] sm:$0x1] }
  0x49   : > { %v820_v63 = vld [vmem:[#allocation2 + $0x6c] sm:$0x1]  ;;  %v821_v0 = vld [vmem:[#allocation2 + $0x7c] sm:$0x1]  ;;  %v931_v1 = vrot.slane %v930_v47, 4  ;;  %v4282_v9 = vpack.c.bf16 %v470_v51, %v470_v51  ;;  %v456_v10 = vadd.f32 %v5026_v5, %v433_v52  ;;  %v5212_v19 = vrot.slane %v561_v58, 7 }
  0x4a   : > { %v919_v11 = vshll.u32 %v820_v63, 16  ;;  %v933_v15 = vshll.u32 %v821_v0, 16  ;;  %v550_v16 = vor.u32 %v548_v45, %v5205_v57  ;;  %v551_v17 = vrot.slane %v5205_v57, 4  ;;  %v744_v43 = vld [vmem:[#allocation2 + $0x40] sm:$0xf] }
  0x4b   : > { %v907_v18 = vrot.slane %v905_v61, 5  ;;  %v577_v20 = vshrl.u32 %v4280_v60, 16  ;;  %v580_v22 = vshll.u32 %v4280_v60, 16  ;;  %v593_v29 = vshrl.u32 %v4282_v9, 16  ;;  %v350_v61 = vld [vmem:[#allocation2 + $0x54] sm:$0x1] }
  0x4c   : > { %v921_v24 = vrot.slane %v919_v11, 5  ;;  %v935_v26 = vrot.slane %v933_v15, 5  ;;  %v709_v27 = vsel %vm5072_vm7, %v550_v16, %v708_v49  ;;  %v566_v31 = vor.u32 %v564_v59, %v5212_v19  ;;  %v756_v11 = vld [vmem:[#allocation2 + $0x50] sm:$0xf]  ;;  %v358_v57 = vld [vmem:[#allocation2 + $0x64] sm:$0x1] }
  0x4d   : > { %v908_v30 = vsel %vm5099_vm8, %v5153_v21, %v907_v18  ;;  %v567_v54 = vrot.slane %v5212_v19, 4  ;;  %710 = vst [vmem:[#allocation2 + $0x10] sm:$0xf] %v709_v27  ;;  %v5221_v56 = vrot.slane %v577_v20, 7  ;;  %v5229_v48 = vrot.slane %v593_v29, 7  ;;  %v416_v21 = vld [vmem:[%s5035_s25 + $0x70] sm:$0xff] }
  0x4e   : > { %v5223_v7 = vcombine.low %v894_v34, %v908_v30  ;;  %v922_v37 = vsel %vm5099_vm8, %v917_v33, %v921_v24  ;;  %v936_v32 = vsel %vm5099_vm8, %v931_v1, %v935_v26  ;;  %v721_v23 = vsel %vm5072_vm7, %v566_v31, %v720_v28  ;;  %v768_v29 = vld [vmem:[#allocation2 + $0x60] sm:$0xf] }
  0x4f   : > { %v5233_v6 = vcombine.low %v922_v37, %v936_v32  ;;  %v582_v8 = vor.u32 %v580_v22, %v5221_v56  ;;  %v583_v34 = vrot.slane %v5221_v56, 4  ;;  %722 = vst [vmem:[#allocation2 + $0x20] sm:$0xf] %v721_v23  ;;  %v596_v33 = vshll.u32 %v4282_v9, 16 }
  0x50   : > { %1147 = vrot.lane.b32.xlu0 %v5223_v7, %s4875_s26  ;;  %v599_v12 = vrot.slane %v5229_v48, 4  ;;  %v458_v38 = vadd.f32 %v5026_v5, %v435_v53  ;;  %v472_v39 = vmax.f32 %v456_v10, 0.0  ;;  %v437_v44 = vmul.f32 %v5016_v2, %v414_v55  ;;  %v417_v53 = vld [vmem:[%s5035_s25 + $0x78] sm:$0xff]  ;;  %s4810_s25 = scalar_lea.vmem %s5878_s21, 1024 }
  0x51   : > { %1149 = vrot.lane.b32.xlu1 %v5233_v6, %s4875_s26  ;;  %v733_v41 = vsel %vm5072_vm7, %v582_v8, %v732_v25  ;;  %v439_v45 = vmul.f32 %v5016_v2, %v416_v21  ;;  %v319_v46 = vsel %vm5019_vm3, 0, %v318_v62  ;;  %v598_v47 = vor.u32 %v596_v33, %v5229_v48  ;;  %p4811_p11 = scmp.ne.s32.totalorder %s5878_s21, %s4810_s25 }
  0x52   : > { %734 = vst [vmem:[#allocation2 + $0x30] sm:$0xf] %v733_v41  ;;  %v474_v49 = vmax.f32 %v458_v38, 0.0  ;;  %v4284_v51 = vpack.c.bf16 %v472_v39, %v472_v39  ;;  %320 = vst [vmem:[#allocation2 + $0x14] sm:$0x1] %v319_v46  ;;  %v327_v52 = vsel %vm5019_vm3, 0, %v326_v35  ;;  %v460_v14 = vadd.f32 %v5026_v5, %v437_v44 }
  0x53   : > { %v462_v58 = vadd.f32 %v5026_v5, %v439_v45  ;;  %328 = vst [vmem:[#allocation2 + $0x24] sm:$0x1] %v327_v52  ;;  %v335_v59 = vsel %vm5019_vm3, 0, %v334_v36  ;;  %v343_v60 = vsel %vm5019_vm3, 0, %v342_v13  ;;  %v745_v63 = vsel %vm5072_vm7, %v598_v47, %v744_v43  ;;  %v780_v39 = vld [vmem:[#allocation2 + $0x70] sm:$0xf]  ;;  %p4812_p12 = pnand %p4811_p11, %p4962_p5 }
  0x54   : > { %v4286_v0 = vpack.c.bf16 %v474_v49, %v474_v49  ;;  %v609_v1 = vshrl.u32 %v4284_v51, 16  ;;  %v612_v9 = vshll.u32 %v4284_v51, 16  ;;  %v1365_v10 = vld [vmem:[#allocation2 + $0x10] sm:$0xf]  ;;  %336 = vst [vmem:[#allocation2 + $0x34] sm:$0x1] %v335_v59  ;;  %v5268_v37 = vmul.f32 %v5016_v2, %v417_v53 }
  0x55   : > { %344 = vst [vmem:[#allocation2 + $0x44] sm:$0x1] %v343_v60  ;;  %746 = vst [vmem:[#allocation2 + $0x40] sm:$0xf] %v745_v63  ;;  %v476_v15 = vmax.f32 %v460_v14, 0.0  ;;  %v478_v16 = vmax.f32 %v462_v58, 0.0  ;;  %p4813_p13 = pneg %p4812_p12 }
  0x56   : > { %v1382_v18 = vshrl.u32 %v1365_v10, 16  ;;  %v1385_v20 = vshll.u32 %v1365_v10, 16  ;;  %v5263_v22 = vrot.slane %v609_v1, 7  ;;  %v625_v24 = vshrl.u32 %v4286_v0, 16  ;;  %v4781_v28 = vld [vmem:[#allocation2 + $0x10] ss:$16 sps:$4 sm:$0xff]  }
  0x57   : > { %v628_v26 = vshll.u32 %v4286_v0, 16  ;;  %v351_v27 = vsel %vm5019_vm3, 0, %v350_v61  ;;  %v4288_v30 = vpack.c.bf16 %v476_v15, %v476_v15  ;;  %v4290_v31 = vpack.c.bf16 %v478_v16, %v478_v16  ;;  %v1367_v25 = vld [vmem:[#allocation2 + $0x20] sm:$0xf]  ;;  %1269 = vrot.lane.b32.xlu0 %v4781_v28, %s4875_s26  ;;  %v366_v61 = vld [vmem:[#allocation2 + $0x74] sm:$0x1] }
  0x58   : > { %352 = vst [vmem:[#allocation2 + $0x54] sm:$0x1] %v351_v27  ;;  %v614_v32 = vor.u32 %v612_v9, %v5263_v22  ;;  %v615_v55 = vrot.slane %v5263_v22, 4  ;;  %v5272_v21 = vrot.slane %v625_v24, 7  ;;  %v1384_v62 = vrot.slane %v1382_v18, 4 }
  0x59   : > { %v641_v23 = vshrl.u32 %v4288_v30, 16  ;;  %v644_v8 = vshll.u32 %v4288_v30, 16  ;;  %v657_v35 = vshrl.u32 %v4290_v31, 16  ;;  %v660_v36 = vshll.u32 %v4290_v31, 16  ;;  %v792_v13 = vld [vmem:[#allocation2 + $0x80] sm:$0xf] }
  0x5a   : > { %v630_v33 = vor.u32 %v628_v26, %v5272_v21  ;;  %v631_v38 = vrot.slane %v5272_v21, 4  ;;  %v757_v2 = vsel %vm5072_vm7, %v614_v32, %v756_v11  ;;  %v711_v41 = vld [vmem:[#allocation2 + $0x14] sm:$0x1]  ;;  %v723_v43 = vld [vmem:[#allocation2 + $0x24] sm:$0x1]  ;;  %v1387_v44 = vrot.slane %v1385_v20, 5 }
  0x5b   : > { %758 = vst [vmem:[#allocation2 + $0x50] sm:$0xf] %v757_v2  ;;  %v5279_v45 = vrot.slane %v641_v23, 7  ;;  %v5281_v46 = vrot.slane %v657_v35, 7  ;;  %v712_v47 = vsel %vm5019_vm3, %v551_v17, %v711_v41  ;;  %v724_v49 = vsel %vm5019_vm3, %v567_v54, %v723_v43  ;;  %v735_v51 = vld [vmem:[#allocation2 + $0x34] sm:$0x1] }
  0x5c   : > { %v747_v52 = vld [vmem:[#allocation2 + $0x44] sm:$0x1]  ;;  %v4782_v53 = vld [vmem:[#allocation2 + $0x30] ss:$16 sps:$4 sm:$0xff]   ;;  %v769_v14 = vsel %vm5072_vm7, %v630_v33, %v768_v29  ;;  %713 = vst [vmem:[#allocation2 + $0x14] sm:$0x1] %v712_v47  ;;  %v1388_v58 = vor.u32 %v1387_v44, %v1384_v62  ;;  %v736_v15 = vsel %vm5019_vm3, %v583_v34, %v735_v51 }
  0x5d   : > { %725 = vst [vmem:[#allocation2 + $0x24] sm:$0x1] %v724_v49  ;;  %v1396_v59 = vshrl.u32 %v1367_v25, 16  ;;  %v1399_v60 = vshll.u32 %v1367_v25, 16  ;;  %770 = vst [vmem:[#allocation2 + $0x60] sm:$0xf] %v769_v14  ;;  %v646_v17 = vor.u32 %v644_v8, %v5279_v45  ;;  %v662_v54 = vor.u32 %v660_v36, %v5281_v46  ;;  %1271 = vrot.lane.b32.xlu1 %v4782_v53, %s4875_s26 }
  0x5e   : > { %v647_v19 = vrot.slane %v5279_v45, 4  ;;  %v663_v63 = vrot.slane %v5281_v46, 4  ;;  %v1369_v0 = vld [vmem:[#allocation2 + $0x30] sm:$0xf]  ;;  %v1371_v1 = vld [vmem:[#allocation2 + $0x40] sm:$0xf]  ;;  %v748_v22 = vsel %vm5019_vm3, %v599_v12, %v747_v52  ;;  %v463_v36 = vadd.f32 %v5026_v5, %v5268_v37 }
  0x5f   : > { %v1389_v9 = vrot.slane %v1388_v58, 4  ;;  %v1398_v10 = vrot.slane %v1396_v59, 4  ;;  %v1401_v11 = vrot.slane %v1399_v60, 5  ;;  %v759_v16 = vld [vmem:[#allocation2 + $0x54] sm:$0x1]  ;;  %v781_v18 = vsel %vm5072_vm7, %v646_v17, %v780_v39 }
  0x60   : > { %v793_v20 = vsel %vm5072_vm7, %v662_v54, %v792_v13  ;;  %737 = vst [vmem:[#allocation2 + $0x34] sm:$0x1] %v736_v15  ;;  %v1410_v24 = vshrl.u32 %v1369_v0, 16  ;;  %782 = vst [vmem:[#allocation2 + $0x70] sm:$0xf] %v781_v18  ;;  %v1413_v26 = vshll.u32 %v1369_v0, 16  ;;  %v760_v31 = vsel %vm5019_vm3, %v615_v55, %v759_v16 }
  0x61   : > { %794 = vst [vmem:[#allocation2 + $0x80] sm:$0xf] %v793_v20  ;;  %v1402_v56 = vor.u32 %v1401_v11, %v1398_v10  ;;  %749 = vst [vmem:[#allocation2 + $0x44] sm:$0x1] %v748_v22  ;;  %v1424_v34 = vshrl.u32 %v1371_v1, 16  ;;  %v1427_v27 = vshll.u32 %v1371_v1, 16 }
  0x62   : > { %v374_v28 = vld [vmem:[#allocation2 + $0x84] sm:$0x1]  ;;  %v1412_v29 = vrot.slane %v1410_v24, 4  ;;  %v359_v30 = vsel %vm5019_vm3, 0, %v358_v57  ;;  %v367_v48 = vsel %vm5019_vm3, 0, %v366_v61  ;;  %v1415_v25 = vrot.slane %v1413_v26, 5 }
  0x63   : > { %v1403_v12 = vrot.slane %v1402_v56, 4  ;;  %v1426_v32 = vrot.slane %v1424_v34, 4  ;;  %v1429_v62 = vrot.slane %v1427_v27, 5  ;;  %360 = vst [vmem:[#allocation2 + $0x64] sm:$0x1] %v359_v30  ;;  %v375_v47 = vsel %vm5019_vm3, 0, %v374_v28 }
  0x64   : > { %761 = vst [vmem:[#allocation2 + $0x54] sm:$0x1] %v760_v31  ;;  %368 = vst [vmem:[#allocation2 + $0x74] sm:$0x1] %v367_v48  ;;  %v1366_v23 = vld [vmem:[#allocation2 + $0x14] sm:$0x1]  ;;  %v1416_v55 = vor.u32 %v1415_v25, %v1412_v29 }
  0x65   : > { %v1368_v8 = vld [vmem:[#allocation2 + $0x24] sm:$0x1]  ;;  %v1373_v35 = vld [vmem:[#allocation2 + $0x50] sm:$0xf]  ;;  %v1391_v2 = vshll.u32 %v1366_v23, 16  ;;  %v1430_v13 = vor.u32 %v1429_v62, %v1426_v32  ;;  %v479_v49 = vmax.f32 %v463_v36, 0.0 }
  0x66   : > { %v4783_v33 = vld [vmem:[#allocation2 + $0x50] ss:$16 sps:$4 sm:$0xff]   ;;  %v1405_v39 = vshll.u32 %v1368_v8, 16  ;;  %v1438_v43 = vshrl.u32 %v1373_v35, 16  ;;  %v1441_v44 = vshll.u32 %v1373_v35, 16  ;;  %v1417_v14 = vrot.slane %v1416_v55, 4 }
  0x67   : > { %v1375_v41 = vld [vmem:[#allocation2 + $0x60] sm:$0xf]  ;;  %1273 = vrot.lane.b32.xlu0 %v4783_v33, %s4875_s26  ;;  %v1393_v51 = vrot.slane %v1391_v2, 5  ;;  %v1370_v53 = vld [vmem:[#allocation2 + $0x34] sm:$0x1]  ;;  %v1431_v58 = vrot.slane %v1430_v13, 4  ;;  %v5328_v15 = vpack.c.bf16 %v479_v49, %v479_v49 }
  0x68   : > { %v1407_v52 = vrot.slane %v1405_v39, 5  ;;  %376 = vst [vmem:[#allocation2 + $0x84] sm:$0x1] %v375_v47  ;;  %v4784_v5 = vld [vmem:[#allocation2 + $0x70] ss:$16 sps:$4 sm:$0xff]   ;;  %v1419_v57 = vshll.u32 %v1370_v53, 16 }
  0x69   : > { %v1394_v37 = vsel %vm5099_vm8, %v1389_v9, %v1393_v51  ;;  %v1372_v60 = vld [vmem:[#allocation2 + $0x44] sm:$0x1]  ;;  %v1440_v61 = vrot.slane %v1438_v43, 4  ;;  %v1377_v17 = vld [vmem:[#allocation2 + $0x70] sm:$0xf]  ;;  %1275 = vrot.lane.b32.xlu1 %v4784_v5, %s4875_s26  ;;  %v1443_v11 = vrot.slane %v1441_v44, 5 }
  0x6a   : > { %v1408_v59 = vsel %vm5099_vm8, %v1403_v12, %v1407_v52  ;;  %v1433_v0 = vshll.u32 %v1372_v60, 16  ;;  %v771_v1 = vld [vmem:[#allocation2 + $0x64] sm:$0x1]  ;;  %v1421_v16 = vrot.slane %v1419_v57, 5  ;;  %v1452_v20 = vshrl.u32 %v1375_v41, 16 }
  0x6b   : > { %v5326_v54 = vcombine.low %v1394_v37, %v1408_v59  ;;  %v1374_v10 = vld [vmem:[#allocation2 + $0x54] sm:$0x1]  ;;  %v772_v9 = vsel %vm5019_vm3, %v631_v38, %v771_v1  ;;  %v1444_v56 = vor.u32 %v1443_v11, %v1440_v61  ;;  %v1455_v26 = vshll.u32 %v1375_v41, 16  ;;  %v1379_v27 = vld [vmem:[#allocation2 + $0x80] sm:$0xf] }
  0x6c   : > { %v1447_v18 = vshll.u32 %v1374_v10, 16  ;;  %v783_v22 = vld [vmem:[#allocation2 + $0x74] sm:$0x1]  ;;  %v1435_v24 = vrot.slane %v1433_v0, 5  ;;  %773 = vst [vmem:[#allocation2 + $0x64] sm:$0x1] %v772_v9  ;;  %v1422_v38 = vsel %vm5099_vm8, %v1417_v14, %v1421_v16 }
  0x6d   : > { %1598 = vrot.lane.b32.xlu0 %v5326_v54, %s4875_s26  ;;  %v784_v34 = vsel %vm5019_vm3, %v647_v19, %v783_v22  ;;  %v310_v21 = vld [vmem:[#allocation2 + $0x4] sm:$0x1]  ;;  %v1454_v29 = vrot.slane %v1452_v20, 4  ;;  %v1466_v30 = vshrl.u32 %v1377_v17, 16  ;;  %v5346_v48 = vrot.slane %v1444_v56, 4 }
  0x6e   : > { %v5342_v28 = vrot.slane %v1447_v18, 5  ;;  %785 = vst [vmem:[#allocation2 + $0x74] sm:$0x1] %v784_v34  ;;  %v1436_v31 = vsel %vm5099_vm8, %v1431_v58, %v1435_v24  ;;  %v1457_v12 = vrot.slane %v1455_v26, 5  ;;  %v1469_v25 = vshll.u32 %v1377_v17, 16 }
  0x6f   : > { %v795_v45 = vld [vmem:[#allocation2 + $0x84] sm:$0x1]  ;;  %v1821_v32 = vld [vmem:[#allocation2 + $0x18] sm:$0xf]  ;;  %v5348_v19 = vcombine.low %v1422_v38, %v1436_v31  ;;  %v1468_v23 = vrot.slane %v1466_v30, 4  ;;  %v1480_v8 = vshrl.u32 %v1379_v27, 16 }
  0x70   : > { %v796_v62 = vsel %vm5019_vm3, %v663_v63, %v795_v45  ;;  %v813_v35 = vld [vmem:[%s5925_s1] sm:$0xf]  ;;  %v1822_v36 = vld [vmem:[#allocation2 + $0x1c] sm:$0x1]  ;;  %v1458_v33 = vor.u32 %v1457_v12, %v1454_v29  ;;  %v1471_v2 = vrot.slane %v1469_v25, 5  ;;  %v1483_v39 = vshll.u32 %v1379_v27, 16 }
  0x71   : > { %797 = vst [vmem:[#allocation2 + $0x84] sm:$0x1] %v796_v62  ;;  %1600 = vrot.lane.b32.xlu1 %v5348_v19, %s4875_s26  ;;  %v1482_v55 = vrot.slane %v1480_v8, 4  ;;  %v665_v46 = vshrl.u32 %v5328_v15, 16  ;;  %v668_v13 = vshll.u32 %v5328_v15, 16  ;;  %v311_v63 = vsel %vm5019_vm3, 0, %v310_v21 }
  0x72   : > { %v1450_v41 = vsel %vm5099_vm8, %v5346_v48, %v5342_v28  ;;  %v1472_v43 = vor.u32 %v1471_v2, %v1468_v23  ;;  %v1485_v44 = vrot.slane %v1483_v39, 5  ;;  %v798_v47 = vld [vmem:[#allocation2 + $0x88] sm:$0xf]  ;;  %312 = vst [vmem:[#allocation2 + $0x4] sm:$0x1] %v311_v63  ;;  %v966_v49 = vsel %vm964_vm10, %v5199_v42, 0 }
  0x73   : > { %v1823_v51 = vld [vmem:[#allocation2 + $0x28] sm:$0xf]  ;;  %v1376_v52 = vld [vmem:[#allocation2 + $0x64] sm:$0x1]  ;;  %v1459_v53 = vrot.slane %v1458_v33, 4  ;;  %v5369_v14 = vrot.slane %v665_v46, 7  ;;  %4397 = vmatpush3.bf16.msra.mxu0 %v966_v49 }
  0x74   : > { %v1824_v58 = vld [vmem:[#allocation2 + $0x2c] sm:$0x1]  ;;  %v1838_v5 = vshrl.u32 %v1821_v32, 16  ;;  %v1841_v37 = vshll.u32 %v1821_v32, 16  ;;  %v5374_v59 = vld [vmem:[%s5925_s1 + $0x8] sm:$0xf]  ;;  %v1486_v61 = vor.u32 %v1485_v44, %v1482_v55  ;;  %4725 = vmatprep.subr.msk.bf16.mxu0 %vm964_vm10, %v813_v35 }
  0x75   : > { %v1461_v60 = vshll.u32 %v1376_v52, 16  ;;  %v1378_v57 = vld [vmem:[#allocation2 + $0x74] sm:$0x1]  ;;  %v1074_v42 = vsel %vm964_vm10, %v813_v35, 0  ;;  %v1847_v17 = vshll.u32 %v1822_v36, 16  ;;  %v1473_v0 = vrot.slane %v1472_v43, 4 }
  0x76   : > { %v1475_v1 = vshll.u32 %v1378_v57, 16  ;;  %v670_v10 = vor.u32 %v668_v13, %v5369_v14  ;;  %v1840_v11 = vrot.slane %v1838_v5, 4  ;;  %v1825_v15 = vld [vmem:[#allocation2 + $0x38] sm:$0xf]  ;;  %v1487_v9 = vrot.slane %v1486_v61, 4  ;;  %4399 = vmatmul.mubr.msk.bf16.vlgmr.msra.gmra.mrb[0].mxu0 %vm951_vm9, %v5192_v40 }
  0x77   : > { %v1463_v16 = vrot.slane %v1461_v60, 5  ;;  %v1843_v18 = vrot.slane %v1841_v37, 5  ;;  %v5381_v20 = vrot.slane %v1847_v17, 5  ;;  %v1826_v22 = vld [vmem:[#allocation2 + $0x3c] sm:$0x1]  ;;  %4407 = vmatpush3.bf16.msra.mxu0 %v1074_v42  ;;  %4402 = vmatprep.mubr.msk.bf16.mxu0 %vm951_vm9, %v5223_v7  ;;  %v1852_v27 = vshrl.u32 %v1823_v51, 16 }
  0x78   : > { %v1827_v24 = vld [vmem:[#allocation2 + $0x48] sm:$0xf]  ;;  %v1380_v56 = vld [vmem:[#allocation2 + $0x84] sm:$0x1]  ;;  %v1477_v26 = vrot.slane %v1475_v1, 5  ;;  %v799_v34 = vsel %vm5072_vm7, %v670_v10, %v798_v47  ;;  %v1855_v21 = vshll.u32 %v1823_v51, 16  ;;  %4726 = vmatprep.subr.msk.bf16.mxu0 %vm964_vm10, %v5374_v59 }
  0x79   : > { %v1464_v38 = vsel %vm5099_vm8, %v1459_v53, %v1463_v16  ;;  %v1489_v40 = vshll.u32 %v1380_v56, 16  ;;  %800 = vst [vmem:[#allocation2 + $0x88] sm:$0xf] %v799_v34  ;;  %v1844_v28 = vor.u32 %v1843_v18, %v1840_v11  ;;  %v1861_v29 = vshll.u32 %v1824_v58, 16  ;;  %v4785_v45 = vld [vmem:[#allocation2 + $0x18] ss:$16 sps:$4 sm:$0xff]  }
  0x7a   : > { %v5391_v30 = vcombine.low %v1450_v41, %v1464_v38  ;;  %v1854_v31 = vrot.slane %v1852_v27, 4  ;;  %v1857_v48 = vrot.slane %v1855_v21, 5  ;;  %v1478_v12 = vsel %vm5099_vm8, %v1473_v0, %v1477_v26  ;;  %v1828_v23 = vld [vmem:[#allocation2 + $0x4c] sm:$0x1]  ;;  %v1829_v46 = vld [vmem:[#allocation2 + $0x58] sm:$0xf] }
  0x7b   : > { %v1491_v7 = vrot.slane %v1489_v40, 5  ;;  %v1845_v25 = vrot.slane %v1844_v28, 4  ;;  %v1866_v32 = vshrl.u32 %v1825_v15, 16  ;;  %v1869_v8 = vshll.u32 %v1825_v15, 16  ;;  %v4786_v63 = vld [vmem:[#allocation2 + $0x38] ss:$16 sps:$4 sm:$0xff]  }
  0x7c   : > { %1602 = vrot.lane.b32.xlu0 %v5391_v30, %s4875_s26  ;;  %v1858_v62 = vor.u32 %v1857_v48, %v1854_v31  ;;  %v1875_v35 = vshll.u32 %v1826_v22, 16  ;;  %v1880_v36 = vshrl.u32 %v1827_v24, 16  ;;  %v1863_v2 = vrot.slane %v1861_v29, 5  ;;  %v4787_v41 = vld [vmem:[#allocation2 + $0x58] ss:$16 sps:$4 sm:$0xff]  }
  0x7d   : > { %v1492_v33 = vsel %vm5099_vm8, %v1487_v9, %v1491_v7  ;;  %v1868_v39 = vrot.slane %v1866_v32, 4  ;;  %v1883_v55 = vshll.u32 %v1827_v24, 16  ;;  %v1871_v44 = vrot.slane %v1869_v8, 5  ;;  %v1830_v47 = vld [vmem:[#allocation2 + $0x5c] sm:$0x1] }
  0x7e   : > { %v5399_v13 = vcombine.low %v1478_v12, %v1492_v33  ;;  %v1859_v43 = vrot.slane %v1858_v62, 4  ;;  %v1831_v49 = vld [vmem:[#allocation2 + $0x68] sm:$0xf]  ;;  %4403 = vmatmul.mubr.msk.bf16.gmra.mrb[4].mxu0 %vm951_vm9, %v5233_v6  ;;  %v1850_v51 = vsel %vm5099_vm8, %v1845_v25, %v5381_v20  ;;  %v1882_v52 = vrot.slane %v1880_v36, 4  ;;  %v1832_v5 = vld [vmem:[#allocation2 + $0x6c] sm:$0x1] }
  0x7f   : > { %v1885_v53 = vrot.slane %v1883_v55, 5  ;;  %v1889_v58 = vshll.u32 %v1828_v23, 16  ;;  %v1872_v37 = vor.u32 %v1871_v44, %v1868_v39  ;;  %v1877_v60 = vrot.slane %v1875_v35, 5  ;;  %v378_v1 = vld [vmem:[#allocation2 + $0x8c] sm:$0x1] }
  0x80   : > { %1604 = vrot.lane.b32.xlu1 %v5399_v13, %s4875_s26  ;;  %1725 = vrot.lane.b32.xlu0 %v4785_v45, %s4875_s26  ;;  %v1894_v57 = vshrl.u32 %v1829_v46, 16  ;;  %v1897_v61 = vshll.u32 %v1829_v46, 16  ;;  %v1864_v6 = vsel %vm5099_vm8, %v1859_v43, %v1863_v2  ;;  %v1903_v0 = vshll.u32 %v1830_v47, 16  ;;  %v4788_v22 = vld [vmem:[#allocation2 + $0x78] ss:$16 sps:$4 sm:$0xff]  }
  0x81   : > { %v1886_v42 = vor.u32 %v1885_v53, %v1882_v52  ;;  %v1891_v17 = vrot.slane %v1889_v58, 5  ;;  %v1873_v10 = vrot.slane %v1872_v37, 4  ;;  %v1908_v16 = vshrl.u32 %v1831_v49, 16  ;;  %v1833_v28 = vld [vmem:[#allocation2 + $0x78] sm:$0xf] }
  0x82   : > { %v1896_v11 = vrot.slane %v1894_v57, 4  ;;  %v1899_v15 = vrot.slane %v1897_v61, 5  ;;  %v1911_v18 = vshll.u32 %v1831_v49, 16  ;;  %v1917_v20 = vshll.u32 %v1832_v5, 16  ;;  %v1835_v12 = vld [vmem:[#allocation2 + $0x88] sm:$0xf] }
  0x83   : > { %v1887_v9 = vrot.slane %v1886_v42, 4  ;;  %v5413_v24 = vcombine.low %v1850_v51, %v1864_v6  ;;  %v1910_v26 = vrot.slane %v1908_v16, 4  ;;  %v379_v34 = vsel %vm5019_vm3, 0, %v378_v1  ;;  %v1834_v46 = vld [vmem:[#allocation2 + $0x7c] sm:$0x1] }
  0x84   : > { %1727 = vrot.lane.b32.xlu1 %v4786_v63, %s4875_s26  ;;  %1729 = vrot.lane.b32.xlu0 %v4787_v41, %s4875_s26  ;;  %v1900_v56 = vor.u32 %v1899_v15, %v1896_v11  ;;  %v1878_v27 = vsel %vm5099_vm8, %v1873_v10, %v1877_v60  ;;  %v1905_v38 = vrot.slane %v1903_v0, 5  ;;  %v1913_v40 = vrot.slane %v1911_v18, 5  ;;  %380 = vst [vmem:[#allocation2 + $0x8c] sm:$0x1] %v379_v34  ;;  %v4089_v0 = vld [vmem:[%s5925_s1 + $0xc] sm:$0xf] }
  0x85   : > { %v1892_v21 = vsel %vm5099_vm8, %v1887_v9, %v1891_v17  ;;  %v1919_v48 = vrot.slane %v1917_v20, 5  ;;  %v1922_v45 = vshrl.u32 %v1833_v28, 16  ;;  %v1925_v25 = vshll.u32 %v1833_v28, 16  ;;  %v4098_v15 = vld [vmem:[%s5925_s1 + $0x10] sm:$0xf] }
  0x86   : > { %v1901_v29 = vrot.slane %v1900_v56, 4  ;;  %v1914_v31 = vor.u32 %v1913_v40, %v1910_v26  ;;  %v5424_v7 = vcombine.low %v1878_v27, %v1892_v21  ;;  %v671_v32 = vrot.slane %v5369_v14, 4  ;;  %v4107_v56 = vld [vmem:[%s5925_s1 + $0x14] sm:$0xf]  ;;  %v4112_v21 = vld [vmem:[%s5925_s1 + $0x18] sm:$0xf] }
  0x87   : > { %v1936_v8 = vshrl.u32 %v1835_v12, 16  ;;  %v1939_v35 = vshll.u32 %v1835_v12, 16  ;;  %v1924_v39 = vrot.slane %v1922_v45, 4  ;;  %v1927_v55 = vrot.slane %v1925_v25, 5 }
  0x88   : > { %1731 = vrot.lane.b32.xlu1 %v4788_v22, %s4875_s26  ;;  %2053 = vrot.lane.b32.xlu0 %v5413_v24, %s4875_s26  ;;  %v1906_v62 = vsel %vm5099_vm8, %v1901_v29, %v1905_v38  ;;  %v1915_v23 = vrot.slane %v1914_v31, 4  ;;  %v1931_v44 = vshll.u32 %v1834_v46, 16  ;;  %v1164_v6 = vsel %vm964_vm10, %v5374_v59, 0  ;;  %v4121_v31 = vld [vmem:[%s5925_s1 + $0x1c] sm:$0xf] }
  0x89   : > { %v1938_v63 = vrot.slane %v1936_v8, 4  ;;  %v1941_v41 = vrot.slane %v1939_v35, 5  ;;  %v1928_v43 = vor.u32 %v1927_v55, %v1924_v39  ;;  %v1290_v11 = vsel %vm964_vm10, %v4089_v0, 0  ;;  %v5532_v39 = vld [vmem:[%s5930_s6] ss:$0 sm:$0xff] }
  0x8a   : > { %v1920_v36 = vsel %vm5099_vm8, %v1915_v23, %v1919_v48  ;;  %v1933_v51 = vrot.slane %v1931_v44, 5  ;;  %v1520_v20 = vsel %vm964_vm10, %v4098_v15, 0  ;;  %v1619_v27 = vsel %vm964_vm10, %v4107_v56, 0 }
  0x8b   : > { %v5433_v33 = vcombine.low %v1906_v62, %v1920_v36  ;;  %v801_v2 = vld [vmem:[#allocation2 + $0x8c] sm:$0x1]  ;;  %v1942_v47 = vor.u32 %v1941_v41, %v1938_v63  ;;  %v1929_v49 = vrot.slane %v1928_v43, 4  ;;  %v1746_v28 = vsel %vm964_vm10, %v4112_v21, 0  ;;  %v4130_v62 = vld [vmem:[%s5925_s1 + $0x20] sm:$0xf] }
  0x8c   : > { %2055 = vrot.lane.b32.xlu1 %v5424_v7, %s4875_s26  ;;  %v802_v14 = vsel %vm5019_vm3, %v671_v32, %v801_v2  ;;  %v1976_v25 = vsel %vm964_vm10, %v4121_v31, 0  ;;  %v2074_v8 = vsel %vm964_vm10, %v4130_v62, 0  ;;  %vm2376_vm11 = vcmask 130048  }
  0x8d   : > { %2057 = vrot.lane.b32.xlu0 %v5433_v33, %s4875_s26  ;;  %803 = vst [vmem:[#allocation2 + $0x8c] sm:$0x1] %v802_v14  ;;  %v1943_v53 = vrot.slane %v1942_v47, 4  ;;  %v1934_v5 = vsel %vm5099_vm8, %v1929_v49, %v1933_v51  ;;  %v5537_v14 = vld [vmem:[%s5931_s7] ss:$0 sm:$0xff]  ;;  %vm2780_vm12 = vcmask 1042432  }
  0x8e   : > { %vm2781_vm13 = vcmask 1046532  }
  0x8f   : > { %vm5656_vm14 = vmor %vm2780_vm12, %vm2781_vm13 }
  0x94   : > { %v1836_v52 = vld [vmem:[#allocation2 + $0x8c] sm:$0x1] }
  0x95   : > { %v1945_v58 = vshll.u32 %v1836_v52, 16 }
  0x97   : > { %v1947_v37 = vrot.slane %v1945_v58, 5 }
  0x99   : > { %v1948_v60 = vsel %vm5099_vm8, %v1943_v53, %v1947_v37 }
  0x9a   : > { %v5443_v57 = vcombine.low %v1934_v5, %v1948_v60 }
  0x9c   : > { %2059 = vrot.lane.b32.xlu1 %v5443_v57, %s4875_s26  ;;  %s4876_s26 = smov [#allocation4]  }
  0x9d   : > { %s4814_s10 = sshll.u32 %s4876_s26, 4  ;;  %s4815_s10 = int_to_ptr.vmem [resolvable:$false] %s4814_s10 }
  0x9e   : > { %s4816_s12 = scalar_lea.vmem %s4815_s10, 2048  ;;  %p4817_p0 = scmp.lt.s32.totalorder %s5878_s21, %s4815_s10 }
  0x9f   : > { %p4818_p1 = scmp.lt.s32.totalorder %s4816_s12, %s4810_s25 }
  0xa1   : > { %p4819_p2 = por %p4818_p1, %p4817_p0 }
  0xa3   : > { %p4820_p3 = pnand %p4819_p2, %p4813_p13 }
  0xa9   : > { %v1054_v61 = vpop.permute.xlu0 %1053 }
  0xaa   : > { %4408 = vmatprep.mubr.msk.bf16.mxu0 %vm951_vm9, %v1054_v61 }
  0xad   : > { %v1056_v42 = vpop.permute.xlu0 %1055 }
  0xae   : > { %v1058_v17 = vpop.permute.xlu1 %1057  ;;  %4409 = vmatmul.mubr.msk.bf16.vlgmr.msra.gmra.mrb[0].mxu0 %vm951_vm9, %v1056_v42 }
  0xaf   : > { %4417 = vmatpush3.bf16.msra.mxu0 %v1164_v6  ;;  %4412 = vmatprep.mubr.msk.bf16.mxu0 %vm951_vm9, %v1058_v17 }
  0xb0   : > { %4727 = vmatprep.subr.msk.bf16.mxu0 %vm964_vm10, %v4089_v0 }
  0xb3   : > { %v1144_v1 = vpop.permute.xlu0 %1143 }
  0xb6   : > { %v1060_v10 = vpop.permute.xlu1 %1059 }
  0xb7   : > { %4413 = vmatmul.mubr.msk.bf16.gmra.mrb[4].mxu0 %vm951_vm9, %v1060_v10 }
  0xb8   : > { %4418 = vmatprep.mubr.msk.bf16.mxu0 %vm951_vm9, %v1144_v1 }
  0xba   : > { %v1146_v59 = vpop.permute.xlu1 %1145 }
  0xbf   : > { %4419 = vmatmul.mubr.msk.bf16.vlgmr.msra.gmra.mrb[0].mxu0 %vm951_vm9, %v1146_v59 }
  0xc0   : > { %4427 = vmatpush3.bf16.msra.mxu0 %v1290_v11  ;;  %v2304_v11 = vld [vmem:[#allocation3 + $0x18] sm:$0xf] }
  0xc1   : > { %4728 = vmatprep.subr.msk.bf16.mxu0 %vm964_vm10, %v4098_v15  ;;  %v2307_v15 = vld [vmem:[#allocation3 + $0x1c] sm:$0x1] }
  0xc2   : > { %v1148_v16 = vpop.permute.xlu0 %1147 }
  0xc3   : > { %4422 = vmatprep.mubr.msk.bf16.mxu0 %vm951_vm9, %v1148_v16  ;;  %v1150_v9 = vpop.permute.xlu1 %1149 }
  0xc7   : > { %4423 = vmatmul.mubr.msk.bf16.gmra.mrb[4].mxu0 %vm951_vm9, %v1150_v9 }
  0xc9   : > { %v1270_v18 = vpop.permute.xlu0 %1269 }
  0xca   : > { %4428 = vmatprep.mubr.msk.bf16.mxu0 %vm951_vm9, %v1270_v18 }
  0xcf   : > { %v1272_v22 = vpop.permute.xlu1 %1271 }
  0xd0   : > { %4429 = vmatmul.mubr.msk.bf16.vlgmr.msra.gmra.mrb[0].mxu0 %vm951_vm9, %v1272_v22 }
  0xd1   : > { %4437 = vmatpush3.bf16.msra.mxu0 %v1520_v20 }
  0xd2   : > { %4729 = vmatprep.subr.msk.bf16.mxu0 %vm964_vm10, %v4107_v56 }
  0xd9   : > { %v1274_v26 = vpop.permute.xlu0 %1273 }
  0xda   : > { %4432 = vmatprep.mubr.msk.bf16.mxu0 %vm951_vm9, %v1274_v26  ;;  %v2292_v26 = vld [vmem:[#allocation3 + $0x8] sm:$0xf] }
  0xdb   : > { %v1276_v34 = vpop.permute.xlu1 %1275 }
  0xdc   : > { %4433 = vmatmul.mubr.msk.bf16.gmra.mrb[4].mxu0 %vm951_vm9, %v1276_v34 }
  0xdd   : > { %4438 = vmatprep.mubr.msk.bf16.mxu0 %vm951_vm9, %v5326_v54 }
  0xdf   : > { %v1599_v38 = vpop.permute.xlu0 %1598 }
  0xe3   : > { %v1601_v40 = vpop.permute.xlu1 %1600 }
  0xe4   : > { %4439 = vmatmul.mubr.msk.bf16.vlgmr.msra.gmra.mrb[0].mxu0 %vm951_vm9, %v5348_v19 }
  0xe5   : > { %4447 = vmatpush3.bf16.msra.mxu0 %v1619_v27  ;;  %4442 = vmatprep.mubr.msk.bf16.mxu0 %vm951_vm9, %v5391_v30 }
  0xe6   : > { %4730 = vmatprep.subr.msk.bf16.mxu0 %vm964_vm10, %v4112_v21 }
  0xec   : > { %4443 = vmatmul.mubr.msk.bf16.gmra.mrb[4].mxu0 %vm951_vm9, %v5399_v13 }
  0xed   : > { %4448 = vmatprep.mubr.msk.bf16.mxu0 %vm951_vm9, %v1599_v38 }
  0xee   : > { %v1603_v29 = vpop.permute.xlu0 %1602 }
  0xf2   : > { %v1605_v48 = vpop.permute.xlu1 %1604  ;;  %v1726_v12 = vpop.permute.xlu0 %1725 }
  0xf4   : > { %4449 = vmatmul.mubr.msk.bf16.vlgmr.msra.gmra.mrb[0].mxu0 %vm951_vm9, %v1601_v40 }
  0xf5   : > { %4457 = vmatpush3.bf16.msra.mxu0 %v1746_v28  ;;  %4452 = vmatprep.mubr.msk.bf16.mxu0 %vm951_vm9, %v1603_v29  ;;  %v2295_v28 = vld [vmem:[#allocation3 + $0xc] sm:$0x1] }
  0xf6   : > { %4731 = vmatprep.subr.msk.bf16.mxu0 %vm964_vm10, %v4121_v31  ;;  %v1728_v45 = vpop.permute.xlu1 %1727  ;;  %v1730_v32 = vpop.permute.xlu0 %1729 }
  0xfa   : > { %v1732_v23 = vpop.permute.xlu1 %1731  ;;  %v2054_v35 = vpop.permute.xlu0 %2053 }
  0xfc   : > { %4453 = vmatmul.mubr.msk.bf16.gmra.mrb[4].mxu0 %vm951_vm9, %v1605_v48 }
  0xfd   : > { %4458 = vmatprep.mubr.msk.bf16.mxu0 %vm951_vm9, %v1726_v12 }
  0xfe   : > { %v2056_v36 = vpop.permute.xlu1 %2055 }
  0xff   : > { %v2058_v2 = vpop.permute.xlu0 %2057 }
 0x104   : > { %4459 = vmatmul.mubr.msk.bf16.vlgmr.msra.gmra.mrb[0].mxu0 %vm951_vm9, %v1728_v45 }
 0x105   : > { %4467 = vmatpush3.bf16.msra.mxu0 %v1976_v25  ;;  %4462 = vmatprep.mubr.msk.bf16.mxu0 %vm951_vm9, %v1730_v32  ;;  %v2310_v32 = vld [vmem:[#allocation3 + $0x20] sm:$0xf] }
 0x106   : > { %4732 = vmatprep.subr.msk.bf16.mxu0 %vm964_vm10, %v4130_v62 }
 0x10c   : > { %4463 = vmatmul.mubr.msk.bf16.gmra.mrb[4].mxu0 %vm951_vm9, %v1732_v23 }
 0x10d   : > { %4468 = vmatprep.mubr.msk.bf16.mxu0 %vm951_vm9, %v5413_v24 }
 0x10e   : > { %v2060_v24 = vpop.permute.xlu1 %2059 }
 0x114   : > { %4469 = vmatmul.mubr.msk.bf16.vlgmr.msra.gmra.mrb[0].mxu0 %vm951_vm9, %v5424_v7  ;;  %v4789_v7 = vld [vmem:[%s5926_s2] sm:$0xff]  }
 0x115   : > { %4477 = vmatpush3.bf16.msra.mxu0 %v2074_v8  ;;  %4472 = vmatprep.mubr.msk.bf16.mxu0 %vm951_vm9, %v5433_v33  ;;  %v5525_v33 = vld [vmem:[%s5927_s3] sm:$0xf] }
 0x116   : > { %4486 = vmatprep.subr.bf16.mxu0 %v4789_v7  ;;  %4586 = vmatprep.subr.bf16.mxu1 %v4789_v7  ;;  %v2455_v4 = vsel %vm964_vm10, %v5525_v33, 0 }
 0x117   : > { %4587 = vmatpush3.bf16.msra.mxu1 %v4789_v7 }
 0x118   : > { %4733 = vmatprep.subr.msk.bf16.mxu1 %vm964_vm10, %v5525_v33 }
 0x11c   : > { %4473 = vmatmul.mubr.msk.bf16.gmra.mrb[4].mxu0 %vm951_vm9, %v5443_v57 }
 0x11d   : > { %4478 = vmatprep.mubr.msk.bf16.mxu0 %vm951_vm9, %v2054_v35  ;;  %v2313_v35 = vld [vmem:[#allocation3 + $0x24] sm:$0x1] }
 0x124   : > { %4479 = vmatmul.mubr.msk.bf16.vlgmr.msra.gmra.mrb[0].mxu0 %vm951_vm9, %v2056_v36 }
 0x125   : > { %4482 = vmatprep.mubr.msk.bf16.mxu0 %vm951_vm9, %v2058_v2  ;;  %4487 = vmatpush3.bf16.msra.mxu0 %v4789_v7 }
 0x12c   : > { %4483 = vmatmul.mubr.msk.bf16.gmra.mrb[4].mxu0 %vm951_vm9, %v2060_v24 }
 0x1f7   : > { %v4480_v55 = vpop.f32.mrb[0].mxu0 }
 0x1f8   : > { %v2158_v46 = vmul.f32 %v4480_v55, %v5532_v39  ;;  %v2110_v63 = vpop.f32.mrb[1].mxu0 }
 0x1f9   : > { %v2156_v41 = vmul.f32 %v5532_v39, %v2110_v63  ;;  %v4481_v43 = vpop.f32.mrb[2].mxu0  ;;  %v2298_v63 = vld [vmem:[#allocation3 + $0x10] sm:$0xf] }
 0x1fa   : > { %v2173_v44 = vadd.f32 %v5537_v14, %v2158_v46  ;;  %v2159_v47 = vmul.f32 %v4481_v43, %v5532_v39  ;;  %v2113_v49 = vpop.f32.mrb[3].mxu0 }
 0x1fb   : > { %v2171_v51 = vadd.f32 %v5537_v14, %v2156_v41  ;;  %v2157_v52 = vmul.f32 %v5532_v39, %v2113_v49  ;;  %v2301_v41 = vld [vmem:[#allocation3 + $0x14] sm:$0x1] }
 0x1fc   : > { %v2181_v53 = vmax.f32 %v2173_v44, 0.0  ;;  %v2174_v58 = vadd.f32 %v5537_v14, %v2159_v47 }
 0x1fd   : > { %v2179_v5 = vmax.f32 %v2171_v51, 0.0  ;;  %v2172_v37 = vadd.f32 %v5537_v14, %v2157_v52 }
 0x1fe   : > { %v4294_v60 = vpack.c.bf16 %v2181_v53, %v2181_v53  ;;  %v2182_v57 = vmax.f32 %v2174_v58, 0.0 }
 0x1ff   : > { %v4292_v61 = vpack.c.bf16 %v2179_v5, %v2179_v5  ;;  %v2180_v6 = vmax.f32 %v2172_v37, 0.0  ;;  %v4484_v42 = vpop.f32.mrb[4].mxu0 }
 0x200   : > { %v2228_v17 = vshrl.u32 %v4294_v60, 16  ;;  %v2231_v0 = vshll.u32 %v4294_v60, 16  ;;  %v4295_v1 = vpack.c.bf16 %v2182_v57, %v2182_v57  ;;  %v2162_v10 = vmul.f32 %v4484_v42, %v5532_v39  ;;  %v2126_v59 = vpop.f32.mrb[5].mxu0  ;;  %v2328_v42 = vld [vmem:[#allocation3 + $0x38] sm:$0xf] }
 0x201   : > { %v2212_v16 = vshrl.u32 %v4292_v61, 16  ;;  %v2215_v9 = vshll.u32 %v4292_v61, 16  ;;  %v4293_v18 = vpack.c.bf16 %v2180_v6, %v2180_v6  ;;  %v2160_v20 = vmul.f32 %v5532_v39, %v2126_v59  ;;  %v4485_v22 = vpop.f32.mrb[6].mxu0 }
 0x202   : > { %v2230_v56 = vrot.slane %v2228_v17, 7  ;;  %v2236_v34 = vshrl.u32 %v4295_v1, 16  ;;  %v2239_v27 = vshll.u32 %v4295_v1, 16  ;;  %v2177_v21 = vadd.f32 %v5537_v14, %v2162_v10  ;;  %v2129_v38 = vpop.f32.mrb[7].mxu0  ;;  %v2331_v17 = vld [vmem:[#allocation3 + $0x3c] sm:$0x1] }
 0x203   : > { %v2214_v40 = vrot.slane %v2212_v16, 7  ;;  %v2220_v29 = vshrl.u32 %v4293_v18, 16  ;;  %v2223_v31 = vshll.u32 %v4293_v18, 16  ;;  %v2175_v48 = vadd.f32 %v5537_v14, %v2160_v20  ;;  %v2316_v16 = vld [vmem:[#allocation3 + $0x28] sm:$0xf] }
 0x204   : > { %v2233_v12 = vor.u32 %v2231_v0, %v2230_v56  ;;  %v2234_v45 = vrot.slane %v2230_v56, 4  ;;  %v2238_v25 = vrot.slane %v2236_v34, 7  ;;  %v2185_v62 = vmax.f32 %v2177_v21, 0.0 }
 0x205   : > { %v2217_v23 = vor.u32 %v2215_v9, %v2214_v40  ;;  %v2218_v8 = vrot.slane %v2214_v40, 4  ;;  %v2222_v36 = vrot.slane %v2220_v29, 7  ;;  %v2183_v2 = vmax.f32 %v2175_v48, 0.0  ;;  %v2319_v9 = vld [vmem:[#allocation3 + $0x2c] sm:$0x1] }
 0x206   : > { %v2305_v24 = vsel %vm5072_vm7, %v2233_v12, %v2304_v11  ;;  %v2308_v7 = vsel %vm5019_vm3, %v2234_v45, %v2307_v15  ;;  %v2241_v55 = vor.u32 %v2239_v27, %v2238_v25  ;;  %v2242_v46 = vrot.slane %v2238_v25, 4  ;;  %v2334_v25 = vld [vmem:[#allocation3 + $0x40] sm:$0xf] }
 0x207   : > { %2306 = vst [vmem:[#allocation3 + $0x18] sm:$0xf] %v2305_v24  ;;  %2309 = vst [vmem:[#allocation3 + $0x1c] sm:$0x1] %v2308_v7  ;;  %v2293_v43 = vsel %vm5072_vm7, %v2217_v23, %v2292_v26  ;;  %v2296_v44 = vsel %vm5019_vm3, %v2218_v8, %v2295_v28  ;;  %v2225_v47 = vor.u32 %v2223_v31, %v2222_v36  ;;  %v2226_v49 = vrot.slane %v2222_v36, 4 }
 0x208   : > { %2294 = vst [vmem:[#allocation3 + $0x8] sm:$0xf] %v2293_v43  ;;  %2297 = vst [vmem:[#allocation3 + $0xc] sm:$0x1] %v2296_v44  ;;  %v2311_v51 = vsel %vm5072_vm7, %v2241_v55, %v2310_v32  ;;  %v2314_v52 = vsel %vm5019_vm3, %v2242_v46, %v2313_v35  ;;  %v4298_v53 = vpack.c.bf16 %v2185_v62, %v2185_v62  ;;  %v2337_v23 = vld [vmem:[#allocation3 + $0x44] sm:$0x1] }
 0x209   : > { %v4296_v58 = vpack.c.bf16 %v2183_v2, %v2183_v2  ;;  %2312 = vst [vmem:[#allocation3 + $0x20] sm:$0xf] %v2311_v51  ;;  %2315 = vst [vmem:[#allocation3 + $0x24] sm:$0x1] %v2314_v52  ;;  %v2299_v5 = vsel %vm5072_vm7, %v2225_v47, %v2298_v63  ;;  %v2302_v37 = vsel %vm5019_vm3, %v2226_v49, %v2301_v41  ;;  %v2322_v8 = vld [vmem:[#allocation3 + $0x30] sm:$0xf] }
 0x20a   : > { %v2163_v60 = vmul.f32 %v4485_v22, %v5532_v39  ;;  %v2161_v57 = vmul.f32 %v5532_v39, %v2129_v38  ;;  %2300 = vst [vmem:[#allocation3 + $0x10] sm:$0xf] %v2299_v5  ;;  %2303 = vst [vmem:[#allocation3 + $0x14] sm:$0x1] %v2302_v37  ;;  %v2260_v61 = vshrl.u32 %v4298_v53, 16  ;;  %v2263_v59 = vshll.u32 %v4298_v53, 16 }
 0x20b   : > { %v2244_v6 = vshrl.u32 %v4296_v58, 16  ;;  %v2247_v15 = vshll.u32 %v4296_v58, 16  ;;  %v2325_v35 = vld [vmem:[#allocation3 + $0x34] sm:$0x1]  ;;  %v2522_v44 = vld [vmem:[#allocation3] sm:$0xf] }
 0x20c   : > { %v2178_v0 = vadd.f32 %v5537_v14, %v2163_v60  ;;  %v2176_v1 = vadd.f32 %v5537_v14, %v2161_v57  ;;  %v2262_v10 = vrot.slane %v2260_v61, 7  ;;  %v2539_v49 = vshrl.u32 %v2522_v44, 16  ;;  %v5595_v5 = vld [vmem:[#allocation3 + $0x4] sm:$0x1] }
 0x20d   : > { %v2246_v11 = vrot.slane %v2244_v6, 7  ;;  %v2542_v51 = vshll.u32 %v2522_v44, 16 }
 0x20e   : > { %v2186_v18 = vmax.f32 %v2178_v0, 0.0  ;;  %v2184_v20 = vmax.f32 %v2176_v1, 0.0  ;;  %v2265_v39 = vor.u32 %v2263_v59, %v2262_v10  ;;  %v2266_v22 = vrot.slane %v2262_v10, 4  ;;  %v2528_v0 = vld [vmem:[#allocation3 + $0x18] sm:$0xf] }
 0x20f   : > { %v2249_v56 = vor.u32 %v2247_v15, %v2246_v11  ;;  %v2250_v26 = vrot.slane %v2246_v11, 4  ;;  %v4790_v21 = vld [vmem:[#allocation3] ss:$8 sps:$4 sm:$0xff]   ;;  %v2541_v37 = vrot.slane %v2539_v49, 4  ;;  %v2544_v60 = vrot.slane %v2542_v51, 5 }
 0x210   : > { %v4299_v34 = vpack.c.bf16 %v2186_v18, %v2186_v18  ;;  %v4297_v27 = vpack.c.bf16 %v2184_v20, %v2184_v20  ;;  %v2329_v38 = vsel %vm5072_vm7, %v2265_v39, %v2328_v42  ;;  %v2332_v14 = vsel %vm5019_vm3, %v2266_v22, %v2331_v17  ;;  %4488 = vmatprep.mubr.msk.bf16.mxu0 %vm2376_vm11, %v4790_v21  ;;  %v2524_v47 = vld [vmem:[#allocation3 + $0x8] sm:$0xf]  ;;  %v5601_v17 = vld [vmem:[#allocation3 + $0xc] sm:$0x1]  ;;  %v2530_v59 = vld [vmem:[#allocation3 + $0x20] sm:$0xf] }
 0x211   : > { %v2317_v40 = vsel %vm5072_vm7, %v2249_v56, %v2316_v16  ;;  %v2320_v28 = vsel %vm5019_vm3, %v2250_v26, %v2319_v9  ;;  %2330 = vst [vmem:[#allocation3 + $0x38] sm:$0xf] %v2329_v38  ;;  %2333 = vst [vmem:[#allocation3 + $0x3c] sm:$0x1] %v2332_v14  ;;  %v4791_v48 = vld [vmem:[#allocation3 + $0x10] ss:$8 sps:$4 sm:$0xff]   ;;  %v2545_v11 = vor.u32 %v2544_v60, %v2541_v37 }
 0x212   : > { %2318 = vst [vmem:[#allocation3 + $0x28] sm:$0xf] %v2317_v40  ;;  %2321 = vst [vmem:[#allocation3 + $0x2c] sm:$0x1] %v2320_v28  ;;  %v2268_v29 = vshrl.u32 %v4299_v34, 16  ;;  %v2252_v31 = vshrl.u32 %v4297_v27, 16  ;;  %4489 = vmatmul.mubr.msk.bf16.vlgmr.msra.gmra.mrb[8].mxu0 %vm2376_vm11, %v4791_v48 }
 0x213   : > { %v2271_v45 = vshll.u32 %v4299_v34, 16  ;;  %v2255_v62 = vshll.u32 %v4297_v27, 16  ;;  %v2553_v52 = vshrl.u32 %v2524_v47, 16  ;;  %v2556_v53 = vshll.u32 %v2524_v47, 16  ;;  %v2526_v6 = vld [vmem:[#allocation3 + $0x10] sm:$0xf] }
 0x214   : > { %v2270_v12 = vrot.slane %v2268_v29, 7  ;;  %v2254_v32 = vrot.slane %v2252_v31, 7  ;;  %v2548_v42 = vshll.u32 %v5595_v5, 16  ;;  %v2567_v1 = vshrl.u32 %v2526_v6, 16  ;;  %v5613_v29 = vld [vmem:[#allocation3 + $0x14] sm:$0x1] }
 0x215   : > { %v2555_v57 = vrot.slane %v2553_v52, 4  ;;  %v2558_v61 = vrot.slane %v2556_v53, 5  ;;  %v2570_v10 = vshll.u32 %v2526_v6, 16  ;;  %v2581_v18 = vshrl.u32 %v2528_v0, 16 }
 0x216   : > { %v2273_v36 = vor.u32 %v2271_v45, %v2270_v12  ;;  %v2274_v2 = vrot.slane %v2270_v12, 4  ;;  %v2257_v24 = vor.u32 %v2255_v62, %v2254_v32  ;;  %v2258_v7 = vrot.slane %v2254_v32, 4 }
 0x217   : > { %v2559_v15 = vor.u32 %v2558_v61, %v2555_v57  ;;  %v2584_v20 = vshll.u32 %v2528_v0, 16  ;;  %v2562_v39 = vshll.u32 %v5601_v17, 16  ;;  %v2595_v22 = vshrl.u32 %v2530_v59, 16 }
 0x218   : > { %v2335_v55 = vsel %vm5072_vm7, %v2273_v36, %v2334_v25  ;;  %v2338_v46 = vsel %vm5019_vm3, %v2274_v2, %v2337_v23  ;;  %v2323_v63 = vsel %vm5072_vm7, %v2257_v24, %v2322_v8  ;;  %v2326_v41 = vsel %vm5019_vm3, %v2258_v7, %v2325_v35  ;;  %v2536_v32 = vld [vmem:[#allocation3 + $0x38] sm:$0xf] }
 0x219   : > { %2336 = vst [vmem:[#allocation3 + $0x40] sm:$0xf] %v2335_v55  ;;  %2339 = vst [vmem:[#allocation3 + $0x44] sm:$0x1] %v2338_v46  ;;  %v4792_v43 = vld [vmem:[#allocation3 + $0x20] ss:$8 sps:$4 sm:$0xff]  }
 0x21a   : > { %2324 = vst [vmem:[#allocation3 + $0x30] sm:$0xf] %v2323_v63  ;;  %2327 = vst [vmem:[#allocation3 + $0x34] sm:$0x1] %v2326_v41  ;;  %4492 = vmatprep.mubr.msk.bf16.mxu1 %vm2376_vm11, %v4792_v43  ;;  %v2532_v33 = vld [vmem:[#allocation3 + $0x28] sm:$0xf] }
 0x21b   : > { %v2609_v16 = vshrl.u32 %v2532_v33, 16  ;;  %v2612_v9 = vshll.u32 %v2532_v33, 16  ;;  %v2598_v56 = vshll.u32 %v2530_v59, 16  ;;  %v2550_v26 = vrot.slane %v2548_v42, 5  ;;  %v5618_v23 = vld [vmem:[#allocation3 + $0x2c] sm:$0x1] }
 0x21c   : > { %v2569_v34 = vrot.slane %v2567_v1, 4  ;;  %v2572_v27 = vrot.slane %v2570_v10, 5  ;;  %v2546_v21 = vrot.slane %v2545_v11, 4  ;;  %v2560_v38 = vrot.slane %v2559_v15, 4  ;;  %v5625_v55 = vld [vmem:[#allocation3 + $0x24] sm:$0x1] }
 0x21d   : > { %v2611_v14 = vrot.slane %v2609_v16, 4  ;;  %v2614_v40 = vrot.slane %v2612_v9, 5  ;;  %v2583_v31 = vrot.slane %v2581_v18, 4  ;;  %v2586_v48 = vrot.slane %v2584_v20, 5  ;;  %v5639_v10 = vld [vmem:[#allocation3 + $0x3c] sm:$0x1] }
 0x21e   : > { %v2564_v12 = vrot.slane %v2562_v39, 5  ;;  %v2597_v45 = vrot.slane %v2595_v22, 4  ;;  %v2600_v25 = vrot.slane %v2598_v56, 5  ;;  %v2573_v62 = vor.u32 %v2572_v27, %v2569_v34  ;;  %v2756_v16 = vld [vmem:[#allocation3] sm:$0xe]  ;;  %v4796_v39 = vld [vmem:[%s5926_s2 + $0x18] sm:$0xff]  }
 0x21f   : > { %v2615_v2 = vor.u32 %v2614_v40, %v2611_v14  ;;  %v2576_v24 = vshll.u32 %v5613_v29, 16  ;;  %v2587_v7 = vor.u32 %v2586_v48, %v2583_v31  ;;  %v2637_v46 = vshrl.u32 %v2536_v32, 16  ;;  %v2757_v9 = vld [vmem:[#allocation3 + $0x8] sm:$0xe] }
 0x220   : > { %v2565_v36 = vsel %vm5099_vm8, %v2560_v38, %v2564_v12  ;;  %v2640_v63 = vshll.u32 %v2536_v32, 16  ;;  %v2601_v43 = vor.u32 %v2600_v25, %v2597_v45  ;;  %v2618_v44 = vshll.u32 %v5618_v23, 16  ;;  %v2761_v45 = vld [vmem:[#allocation3 + $0x28] sm:$0xe]  ;;  %v2759_v32 = vld [vmem:[#allocation3 + $0x18] sm:$0xe] }
 0x221   : > { %v4793_v58 = vld [vmem:[#allocation3 + $0x30] ss:$8 sps:$4 sm:$0xff]   ;;  %v2574_v49 = vrot.slane %v2573_v62, 4  ;;  %v2604_v53 = vshll.u32 %v5625_v55, 16  ;;  %v2639_v37 = vrot.slane %v2637_v46, 4  ;;  %v4169_v34 = vrot.slane %v2756_v16, 9 }
 0x222   : > { %4493 = vmatmul.mubr.msk.bf16.vlgmr.msra.gmra.mrb[0].mxu1 %vm2376_vm11, %v4793_v58  ;;  %v2534_v28 = vld [vmem:[#allocation3 + $0x30] sm:$0xf]  ;;  %v2616_v58 = vrot.slane %v2615_v2, 4  ;;  %v2642_v60 = vrot.slane %v2640_v63, 5  ;;  %v2602_v57 = vrot.slane %v2601_v43, 4  ;;  %v2620_v61 = vrot.slane %v2618_v44, 5 }
 0x223   : > { %4497 = vmatpush3.bf16.msra.mxu1 %v2455_v4  ;;  %4498 = vmatprep.mubr.msk.bf16.mxu1 %vm951_vm9, %v5326_v54  ;;  %v5607_v54 = vld [vmem:[%s5926_s2 + $0x10] sm:$0xff]   ;;  %v2623_v8 = vshrl.u32 %v2534_v28, 16  ;;  %v2626_v35 = vshll.u32 %v2534_v28, 16  ;;  %v2578_v4 = vrot.slane %v2576_v24, 5  ;;  %v5633_v6 = vld [vmem:[#allocation3 + $0x34] sm:$0x1] }
 0x224   : > { %4506 = vmatprep.subr.bf16.mxu1 %v4794_v3  ;;  %v2606_v1 = vrot.slane %v2604_v53, 5  ;;  %v2632_v11 = vshll.u32 %v5633_v6, 16  ;;  %v2643_v15 = vor.u32 %v2642_v60, %v2639_v37  ;;  %v2785_v27 = vrot.slane %v5595_v5, 5  ;;  %v2762_v43 = vld [vmem:[#allocation3 + $0x30] sm:$0xe] }
 0x225   : > { %v2625_v51 = vrot.slane %v2623_v8, 4  ;;  %v2628_v52 = vrot.slane %v2626_v35, 5  ;;  %v2579_v42 = vsel %vm5099_vm8, %v2574_v49, %v2578_v4  ;;  %v2789_v38 = vrot.slane %v5601_v17, 5  ;;  %v2763_v49 = vld [vmem:[#allocation3 + $0x38] sm:$0xe] }
 0x226   : > { %v2607_v20 = vsel %vm5099_vm8, %v2602_v57, %v2606_v1  ;;  %v2634_v14 = vrot.slane %v2632_v11, 5  ;;  %v2644_v40 = vrot.slane %v2643_v15, 4  ;;  %v2786_v5 = vsel %vm5656_vm14, %v4169_v34, %v2785_v27  ;;  %v3045_v4 = vld [vmem:[#allocation3 + $0x10] sm:$0xf]  ;;  %v3043_v37 = vld [vmem:[#allocation3 + $0x8] sm:$0xf] }
 0x227   : > { %v2629_v0 = vor.u32 %v2628_v52, %v2625_v51  ;;  %v2793_v35 = vrot.slane %v5613_v29, 5  ;;  %v2805_v2 = vrot.slane %v5618_v23, 5  ;;  %v4172_v24 = vrot.slane %v2759_v32, 9  ;;  %v3047_v16 = vld [vmem:[#allocation3 + $0x18] sm:$0xf] }
 0x228   : > { %v2801_v63 = vrot.slane %v5625_v55, 5  ;;  %v4175_v51 = vrot.slane %v2762_v43, 9  ;;  %v2809_v52 = vrot.slane %v5633_v6, 5  ;;  %v4176_v53 = vrot.slane %v2763_v49, 9  ;;  %v5697_v34 = vld [vmem:[#allocation3 + $0xc] sm:$0x1] }
 0x229   : > { %v2630_v56 = vrot.slane %v2629_v0, 4  ;;  %v3074_v60 = vshrl.u32 %v3045_v4, 16  ;;  %v3077_v57 = vshll.u32 %v3045_v4, 16  ;;  %v4797_v0 = vld [vmem:[#allocation3 + $0x8] ss:$8 sps:$4 sm:$0xff]   ;;  %v3088_v27 = vshrl.u32 %v3047_v16, 16 }
 0x22a   : > { %4499 = vmatmul.mubr.msk.bf16.vlgmr.msra.gmra.mrb[4].mxu1 %vm951_vm9, %v5348_v19  ;;  %v5616_v19 = vld [vmem:[#allocation3 + $0x1c] sm:$0x1]  ;;  %v5713_v43 = vld [vmem:[#allocation3 + $0x34] sm:$0x1]  ;;  %v4801_v4 = vld [vmem:[#allocation3 + $0x38] ss:$8 sps:$4 sm:$0xff]  }
 0x22b   : > { %4507 = vmatpush3.bf16.msra.mxu1 %v4794_v3  ;;  %4502 = vmatprep.mubr.msk.bf16.mxu1 %vm951_vm9, %v5391_v30  ;;  %v2551_v30 = vsel %vm5099_vm8, %v2546_v21, %v2550_v26  ;;  %v2590_v41 = vshll.u32 %v5616_v19, 16  ;;  %v2588_v3 = vrot.slane %v2587_v7, 4  ;;  %v2646_v26 = vshll.u32 %v5639_v10, 16 }
 0x22c   : > { %4516 = vmatprep.subr.bf16.mxu1 %v5607_v54  ;;  %v4160_v47 = vcombine.low %v2551_v30, %v2565_v36  ;;  %v4170_v21 = vrot.slane %v2757_v9, 9  ;;  %v2635_v31 = vsel %vm5099_vm8, %v2630_v56, %v2634_v14  ;;  %v2760_v30 = vld [vmem:[#allocation3 + $0x20] sm:$0xe]  ;;  %v4174_v36 = vrot.slane %v2761_v45, 9  ;;  %v5695_v9 = vld [vmem:[#allocation3 + $0x14] sm:$0x1] }
 0x22d   : > { %v2592_v33 = vrot.slane %v2590_v41, 5  ;;  %v2648_v48 = vrot.slane %v2646_v26, 5  ;;  %v2797_v7 = vrot.slane %v5616_v19, 5  ;;  %v4173_v46 = vrot.slane %v2760_v30, 9  ;;  %v4798_v19 = vld [vmem:[%s5926_s2 + $0x20] sm:$0xff]  }
 0x22e   : > { %v2790_v17 = vsel %vm5656_vm14, %v4170_v21, %v2789_v38  ;;  %v2806_v29 = vsel %vm5656_vm14, %v4174_v36, %v2805_v2  ;;  %v3076_v1 = vrot.slane %v3074_v60, 4  ;;  %v3091_v21 = vshll.u32 %v3047_v16, 16  ;;  %v4799_v38 = vld [vmem:[#allocation3 + $0x18] ss:$8 sps:$4 sm:$0xff]  }
 0x22f   : > { %v2593_v59 = vsel %vm5099_vm8, %v2588_v3, %v2592_v33  ;;  %v2649_v12 = vsel %vm5099_vm8, %v2644_v40, %v2648_v48  ;;  %v4179_v62 = vcombine.low %v2786_v5, %v2790_v17  ;;  %v2798_v44 = vsel %vm5656_vm14, %v4172_v24, %v2797_v7  ;;  %v4800_v17 = vld [vmem:[#allocation3 + $0x28] ss:$8 sps:$4 sm:$0xff]  }
 0x230   : > { %v4161_v18 = vcombine.low %v2579_v42, %v2593_v59  ;;  %v4163_v25 = vcombine.low %v2635_v31, %v2649_v12  ;;  %v2802_v23 = vsel %vm5656_vm14, %v4173_v46, %v2801_v63  ;;  %v2810_v3 = vsel %vm5656_vm14, %v4175_v51, %v2809_v52  ;;  %v3053_v59 = vld [vmem:[#allocation3 + $0x30] sm:$0xf]  ;;  %v5703_v31 = vld [vmem:[%s5926_s2 + $0x28] sm:$0xff]   ;;  %v5718_v52 = vld [vmem:[#allocation3 + $0x2c] sm:$0x1] }
 0x231   : > { %v4181_v55 = vcombine.low %v2802_v23, %v2806_v29  ;;  %v3060_v42 = vshrl.u32 %v3043_v37, 16  ;;  %v3063_v33 = vshll.u32 %v3043_v37, 16  ;;  %v3130_v56 = vshrl.u32 %v3053_v59, 16  ;;  %v3055_v63 = vld [vmem:[#allocation3 + $0x38] sm:$0xf] }
 0x232   : > { %4503 = vmatmul.mubr.msk.bf16.gmra.mrb[0].mxu1 %vm951_vm9, %v5399_v13  ;;  %v2621_v13 = vsel %vm5099_vm8, %v2616_v58, %v2620_v61  ;;  %v2813_v58 = vrot.slane %v5639_v10, 5  ;;  %v3049_v10 = vld [vmem:[#allocation3 + $0x20] sm:$0xf]  ;;  %v3133_v26 = vshll.u32 %v3053_v59, 16  ;;  %v3083_v40 = vshll.u32 %v5695_v9, 16 }
 0x233   : > { %4508 = vmatprep.mubr.msk.bf16.mxu1 %vm2376_vm11, %v4160_v47  ;;  %v4162_v22 = vcombine.low %v2607_v20, %v2621_v13  ;;  %v3079_v13 = vrot.slane %v3077_v57, 5  ;;  %v3062_v11 = vrot.slane %v3060_v42, 4  ;;  %v3065_v15 = vrot.slane %v3063_v33, 5 }
 0x234   : > { %v2814_v61 = vsel %vm5656_vm14, %v4176_v53, %v2813_v58  ;;  %v3105_v20 = vshll.u32 %v3049_v10, 16  ;;  %v3069_v45 = vshll.u32 %v5697_v34, 16  ;;  %v3132_v32 = vrot.slane %v3130_v56, 4 }
 0x235   : > { %v4182_v6 = vcombine.low %v2810_v3, %v2814_v61  ;;  %v3066_v14 = vor.u32 %v3065_v15, %v3062_v11  ;;  %v3090_v30 = vrot.slane %v3088_v27, 4  ;;  %v3093_v36 = vrot.slane %v3091_v21, 5  ;;  %v5733_v27 = vld [vmem:[#allocation3 + $0x3c] sm:$0x1] }
 0x236   : > { %v3107_v12 = vrot.slane %v3105_v20, 5  ;;  %v3085_v24 = vrot.slane %v3083_v40, 5  ;;  %v3071_v23 = vrot.slane %v3069_v45, 5  ;;  %v3144_v53 = vshrl.u32 %v3055_v63, 16  ;;  %v3278_v40 = vld [vmem:[#allocation3 + $0x10] sm:$0xe] }
 0x237   : > { %v3067_v2 = vrot.slane %v3066_v14, 4  ;;  %v3147_v58 = vshll.u32 %v3055_v63, 16  ;;  %v3139_v57 = vshll.u32 %v5713_v43, 16  ;;  %v3280_v63 = vld [vmem:[#allocation3 + $0x20] sm:$0xe] }
 0x238   : > { %v3146_v59 = vrot.slane %v3144_v53, 4 }
 0x239   : > { %v3072_v3 = vsel %vm5099_vm8, %v3067_v2, %v3071_v23  ;;  %v3149_v11 = vrot.slane %v3147_v58, 5  ;;  %v3141_v16 = vrot.slane %v3139_v57, 5  ;;  %v3303_v2 = vrot.slane %v5697_v34, 5 }
 0x23a   : > { %4509 = vmatmul.mubr.msk.bf16.vlgmr.msra.gmra.mrb[4].mxu1 %vm2376_vm11, %v4161_v18  ;;  %v3102_v18 = vshrl.u32 %v3049_v10, 16  ;;  %v4213_v34 = vrot.slane %v3280_v63, 9 }
 0x23b   : > { %4517 = vmatpush3.bf16.msra.mxu1 %v5607_v54  ;;  %4512 = vmatprep.mubr.msk.bf16.mxu1 %vm2376_vm11, %v4162_v22  ;;  %v2758_v54 = vld [vmem:[#allocation3 + $0x10] sm:$0xe]  ;;  %v3080_v22 = vor.u32 %v3079_v13, %v3076_v1 }
 0x23c   : > { %4526 = vmatprep.subr.bf16.mxu1 %v4796_v39  ;;  %v4171_v8 = vrot.slane %v2758_v54, 9  ;;  %v3104_v54 = vrot.slane %v3102_v18, 4  ;;  %v5727_v18 = vld [vmem:[#allocation3 + $0x44] sm:$0x1] }
 0x23d   : > { %v3167_v14 = vshll.u32 %v5727_v18, 16 }
 0x23e   : > { %v2794_v41 = vsel %vm5656_vm14, %v4171_v8, %v2793_v35  ;;  %v3057_v8 = vld [vmem:[#allocation3 + $0x40] sm:$0xf]  ;;  %v5708_v35 = vld [vmem:[#allocation3 + $0x24] sm:$0x1]  ;;  %v3108_v29 = vor.u32 %v3107_v12, %v3104_v54  ;;  %v3153_v12 = vshll.u32 %v5733_v27, 16 }
 0x23f   : > { %v4180_v47 = vcombine.low %v2794_v41, %v2798_v44  ;;  %v5711_v41 = vld [vmem:[#allocation3 + $0x1c] sm:$0x1]  ;;  %v3158_v44 = vshrl.u32 %v3057_v8, 16  ;;  %v3111_v51 = vshll.u32 %v5708_v35, 16 }
 0x240   : > { %v3097_v37 = vshll.u32 %v5711_v41, 16  ;;  %v3311_v58 = vrot.slane %v5711_v41, 5  ;;  %v4805_v41 = vld [vmem:[%s5926_s2 + $0x38] sm:$0xff]  }
 0x241   : > { %v3160_v42 = vrot.slane %v3158_v44, 4  ;;  %v3113_v10 = vrot.slane %v3111_v51, 5  ;;  %v3323_v51 = vrot.slane %v5713_v43, 5 }
 0x242   : > { %4513 = vmatmul.mubr.msk.bf16.gmra.mrb[0].mxu1 %vm2376_vm11, %v4163_v25  ;;  %v3081_v25 = vrot.slane %v3080_v22, 4  ;;  %v3099_v20 = vrot.slane %v3097_v37, 5 }
 0x243   : > { %4518 = vmatprep.mubr.msk.bf16.mxu1 %vm2376_vm11, %v4179_v62  ;;  %v3135_v62 = vrot.slane %v3133_v26, 5 }
 0x244   : > { %v3086_v49 = vsel %vm5099_vm8, %v3081_v25, %v3085_v24  ;;  %v3277_v25 = vld [vmem:[#allocation3 + $0x8] sm:$0xe]  ;;  %v3155_v24 = vrot.slane %v3153_v12, 5 }
 0x245   : > { %v4201_v61 = vcombine.low %v3072_v3, %v3086_v49  ;;  %v3315_v49 = vrot.slane %v5708_v35, 5  ;;  %v3319_v3 = vrot.slane %v5718_v52, 5 }
 0x247   : > { %v3316_v37 = vsel %vm5656_vm14, %v4213_v34, %v3315_v49  ;;  %v3574_v49 = vld [vmem:[#allocation3 + $0x40] sm:$0xf] }
 0x24a   : > { %4519 = vmatmul.mubr.msk.bf16.vlgmr.msra.gmra.mrb[4].mxu1 %vm2376_vm11, %v4180_v47  ;;  %v3161_v47 = vshll.u32 %v3057_v8, 16 }
 0x24b   : > { %4527 = vmatpush3.bf16.msra.mxu1 %v4796_v39  ;;  %4522 = vmatprep.mubr.msk.bf16.mxu1 %vm2376_vm11, %v4181_v55  ;;  %v3051_v39 = vld [vmem:[#allocation3 + $0x28] sm:$0xf]  ;;  %v3094_v55 = vor.u32 %v3093_v36, %v3090_v30  ;;  %v3169_v30 = vrot.slane %v3167_v14, 5  ;;  %v4210_v36 = vrot.slane %v3277_v25, 9 }
 0x24c   : > { %4536 = vmatprep.subr.bf16.mxu1 %v4798_v19  ;;  %v3116_v48 = vshrl.u32 %v3051_v39, 16  ;;  %v3119_v5 = vshll.u32 %v3051_v39, 16  ;;  %v3163_v33 = vrot.slane %v3161_v47, 5  ;;  %v3279_v47 = vld [vmem:[#allocation3 + $0x18] sm:$0xe] }
 0x24d   : > { %v3095_v13 = vrot.slane %v3094_v55, 4  ;;  %v3304_v44 = vsel %vm5656_vm14, %v4210_v36, %v3303_v2  ;;  %v4212_v53 = vrot.slane %v3279_v47, 9  ;;  %v4806_v36 = vld [vmem:[#allocation3 + $0x20] ss:$8 sps:$4 sm:$0xff]  }
 0x24e   : > { %v3118_v7 = vrot.slane %v3116_v48, 4  ;;  %v3121_v46 = vrot.slane %v3119_v5, 5  ;;  %v3164_v22 = vor.u32 %v3163_v33, %v3160_v42  ;;  %v3331_v33 = vrot.slane %v5727_v18, 5 }
 0x24f   : > { %v3100_v21 = vsel %vm5099_vm8, %v3095_v13, %v3099_v20  ;;  %v3312_v57 = vsel %vm5656_vm14, %v4212_v53, %v3311_v58  ;;  %v3562_v13 = vld [vmem:[#allocation3 + $0x10] sm:$0xf] }
 0x250   : > { %v3122_v60 = vor.u32 %v3121_v46, %v3118_v7  ;;  %v3165_v45 = vrot.slane %v3164_v22, 4  ;;  %v4804_v22 = vld [vmem:[#allocation3 + $0x10] ss:$8 sps:$4 sm:$0xff]  }
 0x252   : > { %4523 = vmatmul.mubr.msk.bf16.gmra.mrb[0].mxu1 %vm2376_vm11, %v4182_v6  ;;  %v3109_v6 = vrot.slane %v3108_v29, 4  ;;  %v3123_v15 = vrot.slane %v3122_v60, 4  ;;  %v3170_v7 = vsel %vm5099_vm8, %v3165_v45, %v3169_v30  ;;  %v3284_v60 = vld [vmem:[#allocation3 + $0x40] sm:$0xe]  ;;  %v3576_v30 = vld [vmem:[#allocation3 + $0x48] sm:$0xf] }
 0x253   : > { %4528 = vmatprep.mubr.msk.bf16.mxu1 %vm2376_vm11, %v4797_v0  ;;  %v3125_v0 = vshll.u32 %v5718_v52, 16  ;;  %v4217_v42 = vrot.slane %v3284_v60, 9  ;;  %v3680_v53 = vshll.u32 %v3576_v30, 16  ;;  %v5800_v60 = vld [vmem:[#allocation3 + $0x24] sm:$0x1] }
 0x254   : > { %v3114_v39 = vsel %vm5099_vm8, %v3109_v6, %v3113_v10  ;;  %v3283_v6 = vld [vmem:[#allocation3 + $0x38] sm:$0xe] }
 0x255   : > { %v3127_v56 = vrot.slane %v3125_v0, 5  ;;  %v4202_v48 = vcombine.low %v3100_v21, %v3114_v39  ;;  %v4216_v0 = vrot.slane %v3283_v6, 9  ;;  %v3332_v10 = vsel %vm5656_vm14, %v4217_v42, %v3331_v33  ;;  %v3570_v21 = vld [vmem:[#allocation3 + $0x30] sm:$0xf] }
 0x256   : > { %v3635_v45 = vshrl.u32 %v3570_v21, 16  ;;  %v3638_v25 = vshll.u32 %v3570_v21, 16  ;;  %v3666_v6 = vshll.u32 %v3574_v49, 16 }
 0x257   : > { %v3128_v5 = vsel %vm5099_vm8, %v3123_v15, %v3127_v56  ;;  %v3582_v15 = vshll.u32 %v3562_v13, 16 }
 0x258   : > { %v3640_v34 = vrot.slane %v3638_v25, 5 }
 0x25a   : > { %4529 = vmatmul.mubr.msk.bf16.vlgmr.msra.gmra.mrb[4].mxu1 %vm2376_vm11, %v4799_v38  ;;  %v3150_v38 = vor.u32 %v3149_v11, %v3146_v59  ;;  %v3564_v59 = vld [vmem:[#allocation3 + $0x18] sm:$0xf]  ;;  %v3579_v11 = vshrl.u32 %v3562_v13, 16 }
 0x25b   : > { %4537 = vmatpush3.bf16.msra.mxu1 %v4798_v19  ;;  %4532 = vmatprep.mubr.msk.bf16.mxu1 %vm2376_vm11, %v4800_v17  ;;  %v3136_v19 = vor.u32 %v3135_v62, %v3132_v32  ;;  %v4803_v17 = vld [vmem:[%s5926_s2 + $0x30] sm:$0xff]   ;;  %v4211_v32 = vrot.slane %v3278_v40, 9  ;;  %v3307_v62 = vrot.slane %v5695_v9, 5  ;;  %v3593_v20 = vshrl.u32 %v3564_v59, 16 }
 0x25c   : > { %4546 = vmatprep.subr.bf16.mxu1 %v5703_v31  ;;  %v3151_v8 = vrot.slane %v3150_v38, 4  ;;  %v3596_v39 = vshll.u32 %v3564_v59, 16  ;;  %v3581_v56 = vrot.slane %v3579_v11, 4  ;;  %v3566_v40 = vld [vmem:[#allocation3 + $0x20] sm:$0xf] }
 0x25d   : > { %v3137_v1 = vrot.slane %v3136_v19, 4  ;;  %v3308_v46 = vsel %vm5656_vm14, %v4211_v32, %v3307_v62  ;;  %v3281_v19 = vld [vmem:[#allocation3 + $0x28] sm:$0xe]  ;;  %v3595_v38 = vrot.slane %v3593_v20, 4  ;;  %v5786_v32 = vld [vmem:[#allocation3 + $0x1c] sm:$0x1] }
 0x25e   : > { %v3156_v9 = vsel %vm5099_vm8, %v3151_v8, %v3155_v24  ;;  %v4220_v23 = vcombine.low %v3304_v44, %v3308_v46  ;;  %v3598_v14 = vrot.slane %v3596_v39, 5  ;;  %v3607_v62 = vshrl.u32 %v3566_v40, 16  ;;  %v4808_v59 = vld [vmem:[#allocation3 + $0x40] ss:$8 sps:$4 sm:$0xff]  }
 0x25f   : > { %v3142_v26 = vsel %vm5099_vm8, %v3137_v1, %v3141_v16  ;;  %v4204_v29 = vcombine.low %v3156_v9, %v3170_v7  ;;  %v3327_v1 = vrot.slane %v5733_v27, 5  ;;  %v3568_v27 = vld [vmem:[#allocation3 + $0x28] sm:$0xf]  ;;  %v3610_v8 = vshll.u32 %v3566_v40, 16  ;;  %v5792_v7 = vld [vmem:[%s5926_s2 + $0x40] sm:$0xff]  }
 0x260   : > { %v4203_v54 = vcombine.low %v3128_v5, %v3142_v26  ;;  %v3584_v26 = vrot.slane %v3582_v15, 5  ;;  %v3621_v5 = vshrl.u32 %v3568_v27, 16  ;;  %v3599_v24 = vor.u32 %v3598_v14, %v3595_v38  ;;  %v4807_v9 = vld [vmem:[#allocation3 + $0x30] ss:$8 sps:$4 sm:$0xff]  }
 0x261   : > { %v3328_v16 = vsel %vm5656_vm14, %v4216_v0, %v3327_v1  ;;  %v3602_v47 = vshll.u32 %v5786_v32, 16  ;;  %v5807_v1 = vld [vmem:[#allocation3 + $0x3c] sm:$0x1]  ;;  %v3616_v15 = vshll.u32 %v5800_v60, 16 }
 0x262   : > { %4533 = vmatmul.mubr.msk.bf16.gmra.mrb[0].mxu1 %vm2376_vm11, %v4801_v4  ;;  %v4214_v4 = vrot.slane %v3281_v19, 9  ;;  %v4223_v18 = vcombine.low %v3328_v16, %v3332_v10  ;;  %v3585_v12 = vor.u32 %v3584_v26, %v3581_v56  ;;  %v3609_v19 = vrot.slane %v3607_v62, 4 }
 0x263   : > { %4538 = vmatprep.mubr.msk.bf16.mxu1 %vm2376_vm11, %v4201_v61  ;;  %v4221_v61 = vcombine.low %v3312_v57, %v3316_v37  ;;  %v3682_v10 = vrot.slane %v3680_v53, 5  ;;  %v3668_v56 = vrot.slane %v3666_v6, 5  ;;  %v3801_v6 = vld [vmem:[#allocation3 + $0x38] sm:$0xe] }
 0x264   : > { %v3320_v43 = vsel %vm5656_vm14, %v4214_v4, %v3319_v3  ;;  %v3586_v44 = vrot.slane %v3585_v12, 4  ;;  %v3600_v4 = vrot.slane %v3599_v24, 4  ;;  %v5798_v3 = vld [vmem:[#allocation3 + $0x2c] sm:$0x1]  ;;  %v3618_v12 = vrot.slane %v3616_v15, 5 }
 0x265   : > { %v3630_v0 = vshll.u32 %v5798_v3, 16  ;;  %v3796_v24 = vld [vmem:[#allocation3 + $0x10] sm:$0xe] }
 0x267   : > { %v3632_v38 = vrot.slane %v3630_v0, 5  ;;  %v3842_v0 = vrot.slane %v5807_v1, 5 }
 0x26a   : > { %4539 = vmatmul.mubr.msk.bf16.vlgmr.msra.gmra.mrb[4].mxu1 %vm2376_vm11, %v4202_v48  ;;  %v5784_v48 = vld [vmem:[#allocation3 + $0x14] sm:$0x1] }
 0x26b   : > { %4547 = vmatpush3.bf16.msra.mxu1 %v5703_v31  ;;  %4542 = vmatprep.mubr.msk.bf16.mxu1 %vm2376_vm11, %v4203_v54  ;;  %v3282_v31 = vld [vmem:[#allocation3 + $0x30] sm:$0xe]  ;;  %v3572_v54 = vld [vmem:[#allocation3 + $0x38] sm:$0xf]  ;;  %v3588_v2 = vshll.u32 %v5784_v48, 16 }
 0x26c   : > { %4556 = vmatprep.subr.bf16.mxu1 %v4803_v17  ;;  %v4215_v55 = vrot.slane %v3282_v31, 9  ;;  %v3649_v46 = vshrl.u32 %v3572_v54, 16  ;;  %v3652_v63 = vshll.u32 %v3572_v54, 16  ;;  %v3623_v31 = vrot.slane %v3621_v5, 4  ;;  %v5816_v5 = vld [vmem:[#allocation3 + $0x44] sm:$0x1] }
 0x26d   : > { %v3590_v58 = vrot.slane %v3588_v2, 5  ;;  %v3672_v2 = vshll.u32 %v5816_v5, 16 }
 0x26e   : > { %v3324_v35 = vsel %vm5656_vm14, %v4215_v55, %v3323_v51  ;;  %v3612_v55 = vrot.slane %v3610_v8, 5  ;;  %v3677_v51 = vshrl.u32 %v3576_v30, 16  ;;  %v3651_v37 = vrot.slane %v3649_v46, 4 }
 0x26f   : > { %v4222_v52 = vcombine.low %v3320_v43, %v3324_v35  ;;  %v3654_v35 = vrot.slane %v3652_v63, 5  ;;  %v3663_v43 = vshrl.u32 %v3574_v49, 16  ;;  %v3674_v49 = vrot.slane %v3672_v2, 5 }
 0x270   : > { %v3613_v33 = vor.u32 %v3612_v55, %v3609_v19  ;;  %v3679_v13 = vrot.slane %v3677_v51, 4  ;;  %v3826_v55 = vrot.slane %v5786_v32, 5  ;;  %v3834_v32 = vrot.slane %v5798_v3, 5 }
 0x272   : > { %4543 = vmatmul.mubr.msk.bf16.gmra.mrb[0].mxu1 %vm2376_vm11, %v4204_v29  ;;  %v3614_v21 = vrot.slane %v3613_v33, 4  ;;  %v3683_v54 = vor.u32 %v3682_v10, %v3679_v13  ;;  %v4256_v33 = vrot.slane %v3801_v6, 9  ;;  %v3803_v10 = vld [vmem:[#allocation3 + $0x48] sm:$0xe] }
 0x273   : > { %4548 = vmatprep.mubr.msk.bf16.mxu1 %vm2376_vm11, %v4220_v23  ;;  %v3637_v23 = vrot.slane %v3635_v45, 4 }
 0x274   : > { %v3843_v15 = vsel %vm5656_vm14, %v4256_v33, %v3842_v0 }
 0x275   : > { %v3641_v42 = vor.u32 %v3640_v34, %v3637_v23  ;;  %v4251_v23 = vrot.slane %v3796_v24, 9  ;;  %v3822_v34 = vrot.slane %v5784_v48, 5 }
 0x277   : > { %v3642_v26 = vrot.slane %v3641_v42, 4  ;;  %v3830_v42 = vrot.slane %v5800_v60, 5  ;;  %v4258_v60 = vrot.slane %v3803_v10, 9 }
 0x27a   : > { %4549 = vmatmul.mubr.msk.bf16.vlgmr.msra.gmra.mrb[4].mxu1 %vm2376_vm11, %v4221_v61  ;;  %v5802_v61 = vld [vmem:[#allocation3 + $0x34] sm:$0x1] }
 0x27b   : > { %4557 = vmatpush3.bf16.msra.mxu1 %v4803_v17  ;;  %4552 = vmatprep.mubr.msk.bf16.mxu1 %vm2376_vm11, %v4222_v52  ;;  %v3624_v17 = vshll.u32 %v3568_v27, 16  ;;  %v3604_v52 = vrot.slane %v3602_v47, 5  ;;  %v3644_v16 = vshll.u32 %v5802_v61, 16  ;;  %v3658_v27 = vshll.u32 %v5807_v1, 16  ;;  %v3797_v47 = vld [vmem:[#allocation3 + $0x18] sm:$0xe] }
 0x27c   : > { %4566 = vmatprep.subr.bf16.mxu1 %v4805_v41  ;;  %v4252_v19 = vrot.slane %v3797_v47, 9  ;;  %v3838_v50 = vrot.slane %v5802_v61, 5  ;;  %v3846_v1 = vrot.slane %v5816_v5, 5 }
 0x27d   : > { %v3626_v29 = vrot.slane %v3624_v17, 5  ;;  %v3605_v11 = vsel %vm5099_vm8, %v3600_v4, %v3604_v52  ;;  %v3646_v14 = vrot.slane %v3644_v16, 5  ;;  %v5818_v17 = vld [vmem:[#allocation3 + $0x4c] sm:$0x1]  ;;  %v3660_v30 = vrot.slane %v3658_v27, 5 }
 0x27e   : > { %v3686_v62 = vshll.u32 %v5818_v17, 16  ;;  %v3799_v4 = vld [vmem:[#allocation3 + $0x28] sm:$0xe] }
 0x27f   : > { %v3627_v57 = vor.u32 %v3626_v29, %v3623_v31  ;;  %v3647_v8 = vsel %vm5099_vm8, %v3642_v26, %v3646_v14  ;;  %v3684_v29 = vrot.slane %v3683_v54, 4 }
 0x281   : > { %v3628_v39 = vrot.slane %v3627_v57, 4 }
 0x282   : > { %4553 = vmatmul.mubr.msk.bf16.gmra.mrb[0].mxu1 %vm2376_vm11, %v4223_v18  ;;  %v3655_v18 = vor.u32 %v3654_v35, %v3651_v37  ;;  %v3800_v37 = vld [vmem:[#allocation3 + $0x30] sm:$0xe]  ;;  %v3798_v35 = vld [vmem:[#allocation3 + $0x20] sm:$0xe] }
 0x283   : > { %4558 = vmatprep.mubr.msk.bf16.mxu1 %vm2376_vm11, %v4804_v22  ;;  %v3665_v22 = vrot.slane %v3663_v43, 4  ;;  %v3633_v45 = vsel %vm5099_vm8, %v3628_v39, %v3632_v38  ;;  %v4254_v43 = vrot.slane %v3799_v4, 9  ;;  %v4253_v52 = vrot.slane %v3798_v35, 9 }
 0x284   : > { %v3656_v40 = vrot.slane %v3655_v18, 4 }
 0x285   : > { %v3669_v25 = vor.u32 %v3668_v56, %v3665_v22  ;;  %v3835_v13 = vsel %vm5656_vm14, %v4254_v43, %v3834_v32 }
 0x286   : > { %v3661_v63 = vsel %vm5099_vm8, %v3656_v40, %v3660_v30 }
 0x287   : > { %v3670_v31 = vrot.slane %v3669_v25, 4 }
 0x289   : > { %v3675_v51 = vsel %vm5099_vm8, %v3670_v31, %v3674_v49 }
 0x28a   : > { %4559 = vmatmul.mubr.msk.bf16.vlgmr.msra.gmra.mrb[4].mxu1 %vm2376_vm11, %v4806_v36  ;;  %v3619_v36 = vsel %vm5099_vm8, %v3614_v21, %v3618_v12 }
 0x28b   : > { %4567 = vmatpush3.bf16.msra.mxu1 %v4805_v41  ;;  %4562 = vmatprep.mubr.msk.bf16.mxu1 %vm2376_vm11, %v4807_v9  ;;  %v3591_v41 = vsel %vm5099_vm8, %v3586_v44, %v3590_v58  ;;  %v4243_v46 = vcombine.low %v3619_v36, %v3633_v45  ;;  %v4244_v9 = vcombine.low %v3647_v8, %v3661_v63  ;;  %v3688_v44 = vrot.slane %v3686_v62, 5 }
 0x28c   : > { %4576 = vmatprep.subr.bf16.mxu1 %v5792_v7  ;;  %v4242_v20 = vcombine.low %v3591_v41, %v3605_v11  ;;  %v3823_v58 = vsel %vm5656_vm14, %v4251_v23, %v3822_v34  ;;  %v4255_v41 = vrot.slane %v3800_v37, 9  ;;  %v3831_v11 = vsel %vm5656_vm14, %v4253_v52, %v3830_v42 }
 0x28d   : > { %v3689_v53 = vsel %vm5099_vm8, %v3684_v29, %v3688_v44  ;;  %v4262_v61 = vcombine.low %v3831_v11, %v3835_v13 }
 0x28e   : > { %v4245_v48 = vcombine.low %v3675_v51, %v3689_v53  ;;  %v3839_v3 = vsel %vm5656_vm14, %v4255_v41, %v3838_v50 }
 0x28f   : > { %v4263_v16 = vcombine.low %v3839_v3, %v3843_v15 }
 0x292   : > { %4563 = vmatmul.mubr.msk.bf16.gmra.mrb[0].mxu1 %vm2376_vm11, %v4808_v59  ;;  %v3802_v59 = vld [vmem:[#allocation3 + $0x40] sm:$0xe] }
 0x293   : > { %4568 = vmatprep.mubr.msk.bf16.mxu1 %vm2376_vm11, %v4242_v20  ;;  %v4257_v18 = vrot.slane %v3802_v59, 9  ;;  %v3850_v20 = vrot.slane %v5818_v17, 5 }
 0x295   : > { %v3847_v39 = vsel %vm5656_vm14, %v4257_v18, %v3846_v1  ;;  %v3851_v22 = vsel %vm5656_vm14, %v4258_v60, %v3850_v20 }
 0x296   : > { %v4264_v56 = vcombine.low %v3847_v39, %v3851_v22 }
 0x29a   : > { %4569 = vmatmul.mubr.msk.bf16.vlgmr.msra.gmra.mrb[4].mxu1 %vm2376_vm11, %v4243_v46 }
 0x29b   : > { %4577 = vmatpush3.bf16.msra.mxu1 %v5792_v7  ;;  %4572 = vmatprep.mubr.msk.bf16.mxu1 %vm2376_vm11, %v4244_v9  ;;  %v3827_v7 = vsel %vm5656_vm14, %v4252_v19, %v3826_v55 }
 0x29c   : > { %v4261_v57 = vcombine.low %v3823_v58, %v3827_v7 }
 0x2a2   : > { %4573 = vmatmul.mubr.msk.bf16.gmra.mrb[0].mxu1 %vm2376_vm11, %v4245_v48 }
 0x2a3   : > { %4578 = vmatprep.mubr.msk.bf16.mxu1 %vm2376_vm11, %v4261_v57 }
 0x2aa   : > { %4579 = vmatmul.mubr.msk.bf16.vlgmr.msra.gmra.mrb[4].mxu1 %vm2376_vm11, %v4262_v61 }
 0x2ab   : > { %4582 = vmatprep.mubr.msk.bf16.mxu1 %vm2376_vm11, %v4263_v16 }
 0x2b2   : > { %4583 = vmatmul.mubr.msk.bf16.gmra.mrb[0].mxu1 %vm2376_vm11, %v4264_v56 }
 0x2e5   : > { %v4490_v26 = vpop.f32.mrb[8].mxu0 }
 0x2e6   : > { %v2423_v27 = vpop.f32.mrb[9].mxu0 }
 0x2e7   : > { %v4491_v21 = vpop.f32.mrb[10].mxu0 }
 0x2e8   : > { %v2426_v38 = vpop.f32.mrb[11].mxu0 }
 0x37d   : > { %v4580_v14 = vpop.f32.mrb[4].mxu1 }
 0x37e   : > { %v4588_v40 = vadd.f32 %v4580_v14, %v4490_v26  ;;  %v3919_v5 = vpop.f32.mrb[5].mxu1 }
 0x37f   : > { %v4589_v17 = vadd.f32 %v3919_v5, %v2423_v27  ;;  %v4581_v54 = vpop.f32.mrb[6].mxu1 }
 0x380   : > { %3960 = vst.msk [vmem:[%s298_s19 + $0x10] sm:$0xff] %vm2376_vm11, %v4588_v40  ;;  %v4590_v28 = vadd.f32 %v4581_v54, %v4491_v21  ;;  %v3922_v12 = vpop.f32.mrb[7].mxu1 }
 0x381   : > { %3958 = vst.msk [vmem:[%s298_s19] sm:$0xff] %vm2376_vm11, %v4589_v17  ;;  %v4591_v45 = vadd.f32 %v3922_v12, %v2426_v38 }
 0x382   : > { %3961 = vst.msk [vmem:[%s298_s19 + $0x18] sm:$0xff] %vm2376_vm11, %v4590_v28 }
 0x383   : > { %3959 = vst.msk [vmem:[%s298_s19 + $0x8] sm:$0xff] %vm2376_vm11, %v4591_v45 }
 0x385   : > { %v4584_v25 = vpop.f32.mrb[0].mxu1 }
 0x386   : > { %3964 = vst.msk [vmem:[%s298_s19 + $0x30] sm:$0xff] %vm2376_vm11, %v4584_v25  ;;  %v3935_v62 = vpop.f32.mrb[1].mxu1 }
 0x387   : > { %3962 = vst.msk [vmem:[%s298_s19 + $0x20] sm:$0xff] %vm2376_vm11, %v3935_v62  ;;  %v4585_v8 = vpop.f32.mrb[2].mxu1 }
 0x388   : > { %3965 = vst.msk [vmem:[%s298_s19 + $0x38] sm:$0xff] %vm2376_vm11, %v4585_v8  ;;  %v3938_v30 = vpop.f32.mrb[3].mxu1 }
 0x389   : > { %3963 = vst.msk [vmem:[%s298_s19 + $0x28] sm:$0xff] %vm2376_vm11, %v3938_v30 }
 0x38a   : > { %4823 = shalt.err (!%p4820_p3)
}
 0x38b   : > { %s4824_s13 = scalar_lea.hbm %s5876_s24, 1024  ;;  %s4828_s19 = scalar_lea.hbm %s5932_s8, 2048 }
 0x38c   : > { %p4825_p4 = scmp.ne.s32.totalorder %s5876_s24, %s4824_s13  ;;  %p4829_p9 = scmp.lt.u32.totalorder %s5876_s24, %s5932_s8 }
 0x38d   : > { %p4830_p10 = scmp.lt.u32.totalorder %s4828_s19, %s4824_s13  ;;  %p4832_p12 = scmp.lt.u32.totalorder %s4824_s13, %s5876_s24 }
 0x38e   : > { %p4826_p7 = pnand %p4825_p4, %p4962_p5 }
 0x38f   : > { %p4831_p11 = por %p4830_p10, %p4829_p9 }
 0x390   : > { %p4827_p8 = pneg %p4826_p7 }
 0x391   : > { %p4833_p13 = por %p4832_p12, %p4831_p11 }
 0x393   : > { %p4834_p0 = pnand %p4833_p13, %p4827_p8 }
 0x395   : > { %4837 = shalt.err (!%p4834_p0)
}
 0x396   : > { %s4877_s23 = smov 128   ;;  %s4878_s25 = smov 8  }
 0x397   : > { %4734 = dma.vmem_to_hbm [thread:$0]  (%p4962_p5), %s5878_s21, 1024, %s5876_s24, %s5883_s9, %s4877_s23, %s4877_s23, %s4878_s25  }
 0x398 PF: > { %p4740_p1 = scmp.ge.s32.totalorder %s4872_s30, 2  ;;  %s3995_s26 = sand.u32 1, %s4860_s27  }
 0x399   : > { %s3996_s10 = scalar_lea.sflag [#allocation5], %s3995_s26 }
 0x39a   : > { %p4737_p2 = pnand %p4740_p1, %p4966_p6 }
 0x39c   : > { %4855 = dma.done.wait (!%p4737_p2), %s3996_s10, 1024  }
 0x39d   : > { %4857 = vsyncadd (!%p4737_p2), %s3996_s10, 4294966272  ;;  %p18_p3 = scmp.ge.s32.totalorder %s4949_s11, 4   ;;  %s5943_s27 = smov %s4864_s28 }
 0x39e   : > { %s5944_s28 = smov %s4868_s29  ;;  %s5945_s29 = smov %s4960_s14 }
 0x39f   : > { %s5946_s30 = smov %s4949_s11  ;;  %20 = sbr.rel (!%p18_p3) target bundleno = 3 (0x3), region = 108 }
 0x3a6   :  { %4001 = vsyncpa [#allocation5], 1 }
 0x3a7   :  { %4003 = vsyncpa [#allocation5 + $0x1], 1 }

</bundles_post_ra>
